<compile_context>
chip_gen: v6e
topology: v6e:2x2x1
jax: 0.10.0
libtpu: 0.0.40
codegen_flags: <defaults>
</compile_context>

<pallas_src>
import functools
import math

import jax
import jax.numpy as jnp
from jax.experimental import pallas as pl
from jax.experimental.pallas import tpu as pltpu

# ----------------------------- config ---------------------------------------
VOCAB = 512
HIDDEN = 128
NUM_HEADS = 2
HEAD_DIM = HIDDEN // NUM_HEADS
INTERMEDIATE = 256
NUM_LAYERS = 2
MAX_POS = 16
LN_EPS = 1e-12

# misc f32 slab rows (width VOCAB=512, only lanes 0:HIDDEN used unless noted)
ROW_TYPE = 16       # token-type-0 embedding
ROW_EMB_G = 17      # embeddings LayerNorm gamma
ROW_EMB_B = 18      # embeddings LayerNorm beta
ROW_MLM_B = 19      # MLM transform bias
ROW_MLM_LN_G = 20   # MLM transform LayerNorm gamma
ROW_MLM_LN_B = 21   # MLM transform LayerNorm beta
ROW_DEC_B = 22      # decoder bias (full VOCAB width)
MISC_ROWS = 24      # padded to a sublane multiple

# per-layer vector slab rows (width 3*HIDDEN=384)
LROW_QKV_B = 0
LROW_AO_B = 1
LROW_ALN_G = 2
LROW_ALN_B = 3
LROW_I_B = 4
LROW_O_B = 5
LROW_OLN_G = 6
LROW_OLN_B = 7


# ----------------------------- fused Pallas kernel ---------------------------
def _bert_kernel(ids_ref, we_ref, misc_ref, lvec_ref, w1_ref, w2_ref, hw_ref,
                 logits_ref, *, seq):
    """One batch row-block (seq, HIDDEN) of the whole BERT forward."""
    b = pl.program_id(0)
    f32 = jnp.float32
    nhs = NUM_HEADS * seq

    def ln(x, g, beta):
        # LayerNorm statistics in f32 (v5e-safe; bf16 VPU only on v6e/v7x).
        mu = jnp.mean(x, axis=-1, keepdims=True)
        xc = x - mu
        var = jnp.mean(xc * xc, axis=-1, keepdims=True)
        return xc * jax.lax.rsqrt(var + LN_EPS) * g + beta

    def dense(x, w_bf16, bias, act=None):
        # bf16 operands into the MXU, f32 accumulation, f32 epilogue.
        y = jnp.dot(x.astype(jnp.bfloat16), w_bf16,
                    preferred_element_type=f32) + bias
        if act == "gelu":
            # TODO(synk): HF BertForMaskedLM uses exact (erf) GELU; tanh approx here.
            y = jax.nn.gelu(y, approximate=True)
        return y

    def to_heads(x):
        # (seq, HIDDEN) -> (NUM_HEADS*seq, HEAD_DIM): heads stacked on sublanes.
        return jnp.concatenate(
            [x[:, h * HEAD_DIM:(h + 1) * HEAD_DIM] for h in range(NUM_HEADS)],
            axis=0)

    def from_heads(x):
        # (NUM_HEADS*seq, HEAD_DIM) -> (seq, HIDDEN).
        return jnp.concatenate(
            [x[h * seq:(h + 1) * seq, :] for h in range(NUM_HEADS)], axis=1)

    # ---- embeddings: one-hot gather (MXU) + pos/type add + LN -----------------
    tok_rows = [jnp.full((1, VOCAB), ids_ref[b, s], jnp.int32)
                for s in range(seq)]
    tok = jnp.concatenate(tok_rows, axis=0)                        # (seq, V)
    onehot = (tok == jax.lax.broadcasted_iota(jnp.int32, (seq, VOCAB), 1)
              ).astype(f32)
    x = jnp.dot(onehot, we_ref[...], preferred_element_type=f32)   # (seq, H)
    x = (x + misc_ref[0:seq, 0:HIDDEN]                              # position
         + misc_ref[ROW_TYPE:ROW_TYPE + 1, 0:HIDDEN])               # type-0
    x = ln(x, misc_ref[ROW_EMB_G:ROW_EMB_G + 1, 0:HIDDEN],
           misc_ref[ROW_EMB_B:ROW_EMB_B + 1, 0:HIDDEN])

    # Additive cross-head block mask for the merged score matmul (hoisted).
    bias_rows = []
    for r in range(NUM_HEADS):
        bias_rows.append(jnp.concatenate(
            [jnp.full((seq, seq), 0.0 if r == c else -1e30, f32)
             for c in range(NUM_HEADS)], axis=1))
    attn_bias = jnp.concatenate(bias_rows, axis=0)                  # (nhs, nhs)

    scale = 1.0 / math.sqrt(HEAD_DIM)

    # ---- encoder layers (static unroll over NUM_LAYERS=2) ---------------------
    for l in range(NUM_LAYERS):
        # Fused Q,K,V (+aligned lane slices at 0/128/256).
        qkv = dense(x, w1_ref[l, :, 0:3 * HIDDEN],
                    lvec_ref[l, LROW_QKV_B:LROW_QKV_B + 1, 0:3 * HIDDEN])
        q_hs = to_heads(qkv[:, 0:HIDDEN] * scale).astype(jnp.bfloat16)
        k_hs = to_heads(qkv[:, HIDDEN:2 * HIDDEN]).astype(jnp.bfloat16)
        v_hs = to_heads(qkv[:, 2 * HIDDEN:3 * HIDDEN]).astype(jnp.bfloat16)

        # ONE masked score matmul over all heads (contract last axes, no K.T).
        s = jax.lax.dot_general(q_hs, k_hs, (((1,), (1,)), ((), ())),
                                preferred_element_type=f32)         # (nhs, nhs)
        s = s + attn_bias
        s = s - jnp.max(s, axis=-1, keepdims=True)
        p = jnp.exp(s)
        p = p * pl.reciprocal(jnp.sum(p, axis=-1, keepdims=True), approx=True)

        # ONE PV matmul, then back to the lane-dense (seq, HIDDEN) layout.
        ctx = from_heads(jnp.dot(p.astype(jnp.bfloat16), v_hs,
                                 preferred_element_type=f32))

        attn_out = dense(ctx, w1_ref[l, :, 3 * HIDDEN:4 * HIDDEN],
                         lvec_ref[l, LROW_AO_B:LROW_AO_B + 1, 0:HIDDEN])
        x = ln(attn_out + x,
               lvec_ref[l, LROW_ALN_G:LROW_ALN_G + 1, 0:HIDDEN],
               lvec_ref[l, LROW_ALN_B:LROW_ALN_B + 1, 0:HIDDEN])

        inter = dense(x, w1_ref[l, :, 4 * HIDDEN:4 * HIDDEN + INTERMEDIATE],
                      lvec_ref[l, LROW_I_B:LROW_I_B + 1, 0:INTERMEDIATE],
                      act="gelu")
        ffn_out = dense(inter, w2_ref[l],
                        lvec_ref[l, LROW_O_B:LROW_O_B + 1, 0:HIDDEN])
        x = ln(ffn_out + x,
               lvec_ref[l, LROW_OLN_G:LROW_OLN_G + 1, 0:HIDDEN],
               lvec_ref[l, LROW_OLN_B:LROW_OLN_B + 1, 0:HIDDEN])

    # ---- MLM transform + tied-embedding decoder (512-wide, lane-dense) --------
    x = dense(x, hw_ref[:, 0:HIDDEN],
              misc_ref[ROW_MLM_B:ROW_MLM_B + 1, 0:HIDDEN], act="gelu")
    x = ln(x, misc_ref[ROW_MLM_LN_G:ROW_MLM_LN_G + 1, 0:HIDDEN],
           misc_ref[ROW_MLM_LN_B:ROW_MLM_LN_B + 1, 0:HIDDEN])
    logits = dense(x, hw_ref[:, HIDDEN:HIDDEN + VOCAB],
                   misc_ref[ROW_DEC_B:ROW_DEC_B + 1, 0:VOCAB])
    logits_ref[...] = logits.astype(logits_ref.dtype)


# ----------------------------- model glue ------------------------------------
def bert_forward(params, input_ids):
    """BertForMaskedLM(input_ids) with return_dict=False -> (prediction_scores,)."""
    B, S = input_ids.shape

    kernel = functools.partial(_bert_kernel, seq=S)
    grid_spec = pltpu.PrefetchScalarGridSpec(
        num_scalar_prefetch=1,                 # input_ids -> SMEM
        grid=(B,),                             # one batch per grid step
        in_specs=[
            pl.BlockSpec(params["word_emb"].shape, lambda b, ids: (0, 0)),
            pl.BlockSpec(params["misc"].shape, lambda b, ids: (0, 0)),
            pl.BlockSpec(params["layer_vec"].shape, lambda b, ids: (0, 0, 0)),
            pl.BlockSpec(params["layer_w1"].shape, lambda b, ids: (0, 0, 0)),
            pl.BlockSpec(params["layer_w2"].shape, lambda b, ids: (0, 0, 0)),
            pl.BlockSpec(params["head_w"].shape, lambda b, ids: (0, 0)),
        ],
        out_specs=pl.BlockSpec((S, VOCAB), lambda b, ids: (b, 0)),
    )
    logits = pl.pallas_call(
        kernel,
        out_shape=jax.ShapeDtypeStruct((B * S, VOCAB), jnp.float32),
        grid_spec=grid_spec,
        compiler_params=pltpu.CompilerParams(
            dimension_semantics=("parallel",)),   # megacore: batches split
    )(input_ids.astype(jnp.int32),
      params["word_emb"], params["misc"], params["layer_vec"],
      params["layer_w1"], params["layer_w2"], params["head_w"])

    return (logits.reshape(B, S, VOCAB),)


# ----------------------------- deterministic init ----------------------------
def init_params(key):
    def nrm(k, shape):
        return jax.random.normal(k, shape, jnp.float32) * 0.02

    keys = iter(jax.random.split(key, 4 + NUM_LAYERS * 6))
    word_emb = nrm(next(keys), (VOCAB, HIDDEN))
    pos_emb = nrm(next(keys), (MAX_POS, HIDDEN))
    type_emb = nrm(next(keys), (2, HIDDEN))
    mlm_w = nrm(next(keys), (HIDDEN, HIDDEN))

    # misc f32 slab: positions + type-0 + emb-LN + MLM bias/LN + decoder bias.
    misc = jnp.zeros((MISC_ROWS, VOCAB), jnp.float32)
    misc = misc.at[0:MAX_POS, 0:HIDDEN].set(pos_emb)
    misc = misc.at[ROW_TYPE, 0:HIDDEN].set(type_emb[0])
    misc = misc.at[ROW_EMB_G, 0:HIDDEN].set(1.0)      # emb LN gamma
    misc = misc.at[ROW_MLM_LN_G, 0:HIDDEN].set(1.0)   # MLM LN gamma
    # emb LN beta, MLM bias, MLM LN beta, decoder bias stay zero.

    # per-layer f32 vector slab: all biases + LN gammas/betas, one DMA.
    lvec = jnp.zeros((NUM_LAYERS, 8, 3 * HIDDEN), jnp.float32)
    lvec = lvec.at[:, LROW_ALN_G, 0:HIDDEN].set(1.0)
    lvec = lvec.at[:, LROW_OLN_G, 0:HIDDEN].set(1.0)

    # per-layer bf16 weight slabs: [Q | K | V | attn_out | intermediate] and FFN-out.
    w1_layers, w2_layers = [], []
    for _ in range(NUM_LAYERS):
        q = nrm(next(keys), (HIDDEN, HIDDEN))
        k = nrm(next(keys), (HIDDEN, HIDDEN))
        v = nrm(next(keys), (HIDDEN, HIDDEN))
        ao = nrm(next(keys), (HIDDEN, HIDDEN))
        iw = nrm(next(keys), (HIDDEN, INTERMEDIATE))
        ow = nrm(next(keys), (INTERMEDIATE, HIDDEN))
        w1_layers.append(jnp.concatenate([q, k, v, ao, iw], axis=1))  # (H, 768)
        w2_layers.append(ow)                                          # (I, H)
    layer_w1 = jnp.stack(w1_layers).astype(jnp.bfloat16)   # (L, 128, 768)
    layer_w2 = jnp.stack(w2_layers).astype(jnp.bfloat16)   # (L, 256, 128)

    # MLM transform + tied decoder (transpose hoisted to init, built once).
    head_w = jnp.concatenate([mlm_w, word_emb.T], axis=1).astype(jnp.bfloat16)

    return {
        "word_emb": word_emb,        # f32 (512, 128) for the in-kernel gather
        "misc": misc,                # f32 (24, 512)
        "layer_vec": lvec,           # f32 (2, 8, 384)
        "layer_w1": layer_w1,        # bf16 (2, 128, 768)
        "layer_w2": layer_w2,        # bf16 (2, 256, 128)
        "head_w": head_w,            # bf16 (128, 640) = [mlm_w | word_emb.T]
    }


# ----------------------------- main -------------------------------------------
if __name__ == "__main__":
    key = jax.random.PRNGKey(0)
    pkey, ikey = jax.random.split(key)
    params = init_params(pkey)

    B, S = 2, 8
    input_ids = jax.random.randint(ikey, (B, S), 0, VOCAB, dtype=jnp.int32)

    fwd = jax.jit(bert_forward)
    (logits,) = fwd(params, input_ids)
    jax.block_until_ready(logits)
    assert logits.shape == (B, S, VOCAB) and logits.dtype == jnp.float32
    assert bool(jnp.isfinite(logits).all())
    print("KERNEL_OK")
</pallas_src>

<mosaic_0001>
module attributes {stable_mosaic.version = 11 : i64} {
  func.func @_bert_kernel(%arg0: i32, %arg1: memref<2x8xi32, #tpu.memory_space<smem>>, %arg2: memref<512x128xf32, #tpu.memory_space<vmem>>, %arg3: memref<24x512xf32, #tpu.memory_space<vmem>>, %arg4: memref<2x8x384xf32, #tpu.memory_space<vmem>>, %arg5: memref<2x128x768xbf16, #tpu.memory_space<vmem>>, %arg6: memref<2x256x128xbf16, #tpu.memory_space<vmem>>, %arg7: memref<128x640xbf16, #tpu.memory_space<vmem>>, %arg8: memref<8x512xf32, #tpu.memory_space<vmem>>) attributes {dimension_semantics = [#tpu.dimension_semantics<parallel>], iteration_bounds = array<i64: 2>, scalar_prefetch = 1 : i64, scratch_operands = 0 : i64, tpu.core_type = #tpu.core_type<tc>, window_params = [{pipeline_mode = #tpu.pipeline_mode<synchronous>, transform_indices = @transform_0, window_bounds = array<i64: 512, 128>}, {pipeline_mode = #tpu.pipeline_mode<synchronous>, transform_indices = @transform_1, window_bounds = array<i64: 24, 512>}, {pipeline_mode = #tpu.pipeline_mode<synchronous>, transform_indices = @transform_2, window_bounds = array<i64: 2, 8, 384>}, {pipeline_mode = #tpu.pipeline_mode<synchronous>, transform_indices = @transform_3, window_bounds = array<i64: 2, 128, 768>}, {pipeline_mode = #tpu.pipeline_mode<synchronous>, transform_indices = @transform_4, window_bounds = array<i64: 2, 256, 128>}, {pipeline_mode = #tpu.pipeline_mode<synchronous>, transform_indices = @transform_5, window_bounds = array<i64: 128, 640>}, {transform_indices = @transform_6, window_bounds = array<i64: 8, 512>}]} {
    %0 = arith.index_cast %arg0 : i32 to index
    %c0 = arith.constant 0 : index
    %1 = memref.load %arg1[%0, %c0] : memref<2x8xi32, #tpu.memory_space<smem>>
    %2 = vector.broadcast %1 : i32 to vector<1x512xi32>
    %3 = arith.index_cast %arg0 : i32 to index
    %c1 = arith.constant 1 : index
    %4 = memref.load %arg1[%3, %c1] : memref<2x8xi32, #tpu.memory_space<smem>>
    %5 = vector.broadcast %4 : i32 to vector<1x512xi32>
    %6 = arith.index_cast %arg0 : i32 to index
    %c2 = arith.constant 2 : index
    %7 = memref.load %arg1[%6, %c2] : memref<2x8xi32, #tpu.memory_space<smem>>
    %8 = vector.broadcast %7 : i32 to vector<1x512xi32>
    %9 = arith.index_cast %arg0 : i32 to index
    %c3 = arith.constant 3 : index
    %10 = memref.load %arg1[%9, %c3] : memref<2x8xi32, #tpu.memory_space<smem>>
    %11 = vector.broadcast %10 : i32 to vector<1x512xi32>
    %12 = arith.index_cast %arg0 : i32 to index
    %c4 = arith.constant 4 : index
    %13 = memref.load %arg1[%12, %c4] : memref<2x8xi32, #tpu.memory_space<smem>>
    %14 = vector.broadcast %13 : i32 to vector<1x512xi32>
    %15 = arith.index_cast %arg0 : i32 to index
    %c5 = arith.constant 5 : index
    %16 = memref.load %arg1[%15, %c5] : memref<2x8xi32, #tpu.memory_space<smem>>
    %17 = vector.broadcast %16 : i32 to vector<1x512xi32>
    %18 = arith.index_cast %arg0 : i32 to index
    %c6 = arith.constant 6 : index
    %19 = memref.load %arg1[%18, %c6] : memref<2x8xi32, #tpu.memory_space<smem>>
    %20 = vector.broadcast %19 : i32 to vector<1x512xi32>
    %21 = arith.index_cast %arg0 : i32 to index
    %c7 = arith.constant 7 : index
    %22 = memref.load %arg1[%21, %c7] : memref<2x8xi32, #tpu.memory_space<smem>>
    %23 = vector.broadcast %22 : i32 to vector<1x512xi32>
    %24 = tpu.concatenate %2, %5, %8, %11, %14, %17, %20, %23 in 0 : vector<1x512xi32>, vector<1x512xi32>, vector<1x512xi32>, vector<1x512xi32>, vector<1x512xi32>, vector<1x512xi32>, vector<1x512xi32>, vector<1x512xi32> -> vector<8x512xi32>
    %25 = tpu.iota {dimensions = array<i32: 1>} : vector<8x512xi32>
    %26 = arith.cmpi eq, %24, %25 : vector<8x512xi32>
    %27 = arith.extui %26 : vector<8x512xi1> to vector<8x512xi32>
    %28 = arith.sitofp %27 : vector<8x512xi32> to vector<8x512xf32>
    %c0_0 = arith.constant 0 : index
    %c0_1 = arith.constant 0 : index
    %29 = vector.load %arg2[%c0_0, %c0_1] : memref<512x128xf32, #tpu.memory_space<vmem>>, vector<512x128xf32>
    %cst = arith.constant dense<0.000000e+00> : vector<8x128xf32>
    %30 = tpu.matmul %28, %29, %cst {dimension_numbers = #tpu.dot_dimension_numbers<[1], [0], [0], [1], [0, 0, 1, 1], [], []>} : vector<8x512xf32>, vector<512x128xf32>, vector<8x128xf32> -> vector<8x128xf32>
    %c0_2 = arith.constant 0 : index
    %c0_3 = arith.constant 0 : index
    %31 = vector.load %arg3[%c0_2, %c0_3] : memref<24x512xf32, #tpu.memory_space<vmem>>, vector<8x128xf32>
    %32 = arith.addf %30, %31 : vector<8x128xf32>
    %c16 = arith.constant 16 : index
    %c0_4 = arith.constant 0 : index
    %33 = vector.load %arg3[%c16, %c0_4] : memref<24x512xf32, #tpu.memory_space<vmem>>, vector<1x128xf32>
    %34 = vector.broadcast %33 : vector<1x128xf32> to vector<8x128xf32>
    %35 = arith.addf %32, %34 : vector<8x128xf32>
    %c17 = arith.constant 17 : index
    %c0_5 = arith.constant 0 : index
    %36 = vector.load %arg3[%c17, %c0_5] : memref<24x512xf32, #tpu.memory_space<vmem>>, vector<1x128xf32>
    %c18 = arith.constant 18 : index
    %c0_6 = arith.constant 0 : index
    %37 = vector.load %arg3[%c18, %c0_6] : memref<24x512xf32, #tpu.memory_space<vmem>>, vector<1x128xf32>
    %cst_7 = arith.constant dense<0.000000e+00> : vector<8xf32>
    %38 = vector.multi_reduction <add>, %35, %cst_7 [1] : vector<8x128xf32> to vector<8xf32>
    %39 = vector.shape_cast %38 : vector<8xf32> to vector<8x1xf32>
    %cst_8 = arith.constant 1.280000e+02 : f32
    %40 = vector.broadcast %cst_8 : f32 to vector<8x1xf32>
    %41 = arith.divf %39, %40 : vector<8x1xf32>
    %42 = vector.broadcast %41 : vector<8x1xf32> to vector<8x128xf32>
    %43 = arith.subf %35, %42 : vector<8x128xf32>
    %44 = arith.mulf %43, %43 : vector<8x128xf32>
    %cst_9 = arith.constant dense<0.000000e+00> : vector<8xf32>
    %45 = vector.multi_reduction <add>, %44, %cst_9 [1] : vector<8x128xf32> to vector<8xf32>
    %46 = vector.shape_cast %45 : vector<8xf32> to vector<8x1xf32>
    %cst_10 = arith.constant 1.280000e+02 : f32
    %47 = vector.broadcast %cst_10 : f32 to vector<8x1xf32>
    %48 = arith.divf %46, %47 : vector<8x1xf32>
    %cst_11 = arith.constant 9.99999996E-13 : f32
    %49 = vector.broadcast %cst_11 : f32 to vector<8x1xf32>
    %50 = arith.addf %48, %49 : vector<8x1xf32>
    %51 = math.rsqrt %50 : vector<8x1xf32>
    %52 = vector.broadcast %51 : vector<8x1xf32> to vector<8x128xf32>
    %53 = arith.mulf %43, %52 : vector<8x128xf32>
    %54 = vector.broadcast %36 : vector<1x128xf32> to vector<8x128xf32>
    %55 = arith.mulf %53, %54 : vector<8x128xf32>
    %56 = vector.broadcast %37 : vector<1x128xf32> to vector<8x128xf32>
    %57 = arith.addf %55, %56 : vector<8x128xf32>
    %cst_12 = arith.constant 0.000000e+00 : f32
    %58 = vector.broadcast %cst_12 : f32 to vector<8x8xf32>
    %cst_13 = arith.constant -1.000000e+30 : f32
    %59 = vector.broadcast %cst_13 : f32 to vector<8x8xf32>
    %60 = tpu.concatenate %58, %59 in 1 : vector<8x8xf32>, vector<8x8xf32> -> vector<8x16xf32>
    %cst_14 = arith.constant -1.000000e+30 : f32
    %61 = vector.broadcast %cst_14 : f32 to vector<8x8xf32>
    %cst_15 = arith.constant 0.000000e+00 : f32
    %62 = vector.broadcast %cst_15 : f32 to vector<8x8xf32>
    %63 = tpu.concatenate %61, %62 in 1 : vector<8x8xf32>, vector<8x8xf32> -> vector<8x16xf32>
    %64 = tpu.concatenate %60, %63 in 0 : vector<8x16xf32>, vector<8x16xf32> -> vector<16x16xf32>
    %c0_16 = arith.constant 0 : index
    %c0_17 = arith.constant 0 : index
    %c0_18 = arith.constant 0 : index
    %65 = vector.load %arg5[%c0_16, %c0_17, %c0_18] : memref<2x128x768xbf16, #tpu.memory_space<vmem>>, vector<1x128x384xbf16>
    %66 = vector.shape_cast %65 : vector<1x128x384xbf16> to vector<128x384xbf16>
    %c0_19 = arith.constant 0 : index
    %c0_20 = arith.constant 0 : index
    %c0_21 = arith.constant 0 : index
    %67 = vector.load %arg4[%c0_19, %c0_20, %c0_21] : memref<2x8x384xf32, #tpu.memory_space<vmem>>, vector<1x1x384xf32>
    %68 = vector.shape_cast %67 : vector<1x1x384xf32> to vector<1x384xf32>
    %69 = arith.truncf %57 : vector<8x128xf32> to vector<8x128xbf16>
    %cst_22 = arith.constant dense<0.000000e+00> : vector<8x384xf32>
    %70 = tpu.matmul %69, %66, %cst_22 {dimension_numbers = #tpu.dot_dimension_numbers<[1], [0], [0], [1], [0, 0, 1, 1], [], []>} : vector<8x128xbf16>, vector<128x384xbf16>, vector<8x384xf32> -> vector<8x384xf32>
    %71 = vector.broadcast %68 : vector<1x384xf32> to vector<8x384xf32>
    %72 = arith.addf %70, %71 : vector<8x384xf32>
    %73 = vector.extract_strided_slice %72 {offsets = [0, 0], sizes = [8, 128], strides = [1, 1]} : vector<8x384xf32> to vector<8x128xf32>
    %cst_23 = arith.constant 1.250000e-01 : f32
    %74 = vector.broadcast %cst_23 : f32 to vector<8x128xf32>
    %75 = arith.mulf %73, %74 : vector<8x128xf32>
    %76 = vector.extract_strided_slice %75 {offsets = [0, 0], sizes = [8, 64], strides = [1, 1]} : vector<8x128xf32> to vector<8x64xf32>
    %77 = vector.extract_strided_slice %75 {offsets = [0, 64], sizes = [8, 64], strides = [1, 1]} : vector<8x128xf32> to vector<8x64xf32>
    %78 = tpu.concatenate %76, %77 in 0 : vector<8x64xf32>, vector<8x64xf32> -> vector<16x64xf32>
    %79 = arith.truncf %78 : vector<16x64xf32> to vector<16x64xbf16>
    %80 = vector.extract_strided_slice %72 {offsets = [0, 128], sizes = [8, 128], strides = [1, 1]} : vector<8x384xf32> to vector<8x128xf32>
    %81 = vector.extract_strided_slice %80 {offsets = [0, 0], sizes = [8, 64], strides = [1, 1]} : vector<8x128xf32> to vector<8x64xf32>
    %82 = vector.extract_strided_slice %80 {offsets = [0, 64], sizes = [8, 64], strides = [1, 1]} : vector<8x128xf32> to vector<8x64xf32>
    %83 = tpu.concatenate %81, %82 in 0 : vector<8x64xf32>, vector<8x64xf32> -> vector<16x64xf32>
    %84 = arith.truncf %83 : vector<16x64xf32> to vector<16x64xbf16>
    %85 = vector.extract_strided_slice %72 {offsets = [0, 256], sizes = [8, 128], strides = [1, 1]} : vector<8x384xf32> to vector<8x128xf32>
    %86 = vector.extract_strided_slice %85 {offsets = [0, 0], sizes = [8, 64], strides = [1, 1]} : vector<8x128xf32> to vector<8x64xf32>
    %87 = vector.extract_strided_slice %85 {offsets = [0, 64], sizes = [8, 64], strides = [1, 1]} : vector<8x128xf32> to vector<8x64xf32>
    %88 = tpu.concatenate %86, %87 in 0 : vector<8x64xf32>, vector<8x64xf32> -> vector<16x64xf32>
    %89 = arith.truncf %88 : vector<16x64xf32> to vector<16x64xbf16>
    %cst_24 = arith.constant dense<0.000000e+00> : vector<16x16xf32>
    %90 = tpu.matmul %79, %84, %cst_24 {dimension_numbers = #tpu.dot_dimension_numbers<[1], [1], [0], [0], [0, 0, 1, 0], [], []>} : vector<16x64xbf16>, vector<16x64xbf16>, vector<16x16xf32> -> vector<16x16xf32>
    %91 = arith.addf %90, %64 : vector<16x16xf32>
    %cst_25 = arith.constant dense<0xFF800000> : vector<16xf32>
    %92 = vector.multi_reduction <maximumf>, %91, %cst_25 [1] : vector<16x16xf32> to vector<16xf32>
    %93 = vector.shape_cast %92 : vector<16xf32> to vector<16x1xf32>
    %94 = vector.broadcast %93 : vector<16x1xf32> to vector<16x16xf32>
    %95 = arith.subf %91, %94 : vector<16x16xf32>
    %96 = math.exp %95 : vector<16x16xf32>
    %cst_26 = arith.constant dense<0.000000e+00> : vector<16xf32>
    %97 = vector.multi_reduction <add>, %96, %cst_26 [1] : vector<16x16xf32> to vector<16xf32>
    %98 = vector.shape_cast %97 : vector<16xf32> to vector<16x1xf32>
    %99 = tpu.reciprocal %98 {approx = true} : vector<16x1xf32> -> vector<16x1xf32>
    %100 = vector.broadcast %99 : vector<16x1xf32> to vector<16x16xf32>
    %101 = arith.mulf %96, %100 : vector<16x16xf32>
    %102 = arith.truncf %101 : vector<16x16xf32> to vector<16x16xbf16>
    %cst_27 = arith.constant dense<0.000000e+00> : vector<16x64xf32>
    %103 = tpu.matmul %102, %89, %cst_27 {dimension_numbers = #tpu.dot_dimension_numbers<[1], [0], [0], [1], [0, 0, 1, 1], [], []>} : vector<16x16xbf16>, vector<16x64xbf16>, vector<16x64xf32> -> vector<16x64xf32>
    %104 = vector.extract_strided_slice %103 {offsets = [0, 0], sizes = [8, 64], strides = [1, 1]} : vector<16x64xf32> to vector<8x64xf32>
    %105 = vector.extract_strided_slice %103 {offsets = [8, 0], sizes = [8, 64], strides = [1, 1]} : vector<16x64xf32> to vector<8x64xf32>
    %106 = tpu.concatenate %104, %105 in 1 : vector<8x64xf32>, vector<8x64xf32> -> vector<8x128xf32>
    %c0_28 = arith.constant 0 : index
    %c0_29 = arith.constant 0 : index
    %c384 = arith.constant 384 : index
    %107 = vector.load %arg5[%c0_28, %c0_29, %c384] : memref<2x128x768xbf16, #tpu.memory_space<vmem>>, vector<1x128x128xbf16>
    %108 = vector.shape_cast %107 : vector<1x128x128xbf16> to vector<128x128xbf16>
    %c0_30 = arith.constant 0 : index
    %c1_31 = arith.constant 1 : index
    %c0_32 = arith.constant 0 : index
    %109 = vector.load %arg4[%c0_30, %c1_31, %c0_32] : memref<2x8x384xf32, #tpu.memory_space<vmem>>, vector<1x1x128xf32>
    %110 = vector.shape_cast %109 : vector<1x1x128xf32> to vector<1x128xf32>
    %111 = arith.truncf %106 : vector<8x128xf32> to vector<8x128xbf16>
    %cst_33 = arith.constant dense<0.000000e+00> : vector<8x128xf32>
    %112 = tpu.matmul %111, %108, %cst_33 {dimension_numbers = #tpu.dot_dimension_numbers<[1], [0], [0], [1], [0, 0, 1, 1], [], []>} : vector<8x128xbf16>, vector<128x128xbf16>, vector<8x128xf32> -> vector<8x128xf32>
    %113 = vector.broadcast %110 : vector<1x128xf32> to vector<8x128xf32>
    %114 = arith.addf %112, %113 : vector<8x128xf32>
    %115 = arith.addf %114, %57 : vector<8x128xf32>
    %c0_34 = arith.constant 0 : index
    %c2_35 = arith.constant 2 : index
    %c0_36 = arith.constant 0 : index
    %116 = vector.load %arg4[%c0_34, %c2_35, %c0_36] : memref<2x8x384xf32, #tpu.memory_space<vmem>>, vector<1x1x128xf32>
    %117 = vector.shape_cast %116 : vector<1x1x128xf32> to vector<1x128xf32>
    %c0_37 = arith.constant 0 : index
    %c3_38 = arith.constant 3 : index
    %c0_39 = arith.constant 0 : index
    %118 = vector.load %arg4[%c0_37, %c3_38, %c0_39] : memref<2x8x384xf32, #tpu.memory_space<vmem>>, vector<1x1x128xf32>
    %119 = vector.shape_cast %118 : vector<1x1x128xf32> to vector<1x128xf32>
    %cst_40 = arith.constant dense<0.000000e+00> : vector<8xf32>
    %120 = vector.multi_reduction <add>, %115, %cst_40 [1] : vector<8x128xf32> to vector<8xf32>
    %121 = vector.shape_cast %120 : vector<8xf32> to vector<8x1xf32>
    %cst_41 = arith.constant 1.280000e+02 : f32
    %122 = vector.broadcast %cst_41 : f32 to vector<8x1xf32>
    %123 = arith.divf %121, %122 : vector<8x1xf32>
    %124 = vector.broadcast %123 : vector<8x1xf32> to vector<8x128xf32>
    %125 = arith.subf %115, %124 : vector<8x128xf32>
    %126 = arith.mulf %125, %125 : vector<8x128xf32>
    %cst_42 = arith.constant dense<0.000000e+00> : vector<8xf32>
    %127 = vector.multi_reduction <add>, %126, %cst_42 [1] : vector<8x128xf32> to vector<8xf32>
    %128 = vector.shape_cast %127 : vector<8xf32> to vector<8x1xf32>
    %cst_43 = arith.constant 1.280000e+02 : f32
    %129 = vector.broadcast %cst_43 : f32 to vector<8x1xf32>
    %130 = arith.divf %128, %129 : vector<8x1xf32>
    %cst_44 = arith.constant 9.99999996E-13 : f32
    %131 = vector.broadcast %cst_44 : f32 to vector<8x1xf32>
    %132 = arith.addf %130, %131 : vector<8x1xf32>
    %133 = math.rsqrt %132 : vector<8x1xf32>
    %134 = vector.broadcast %133 : vector<8x1xf32> to vector<8x128xf32>
    %135 = arith.mulf %125, %134 : vector<8x128xf32>
    %136 = vector.broadcast %117 : vector<1x128xf32> to vector<8x128xf32>
    %137 = arith.mulf %135, %136 : vector<8x128xf32>
    %138 = vector.broadcast %119 : vector<1x128xf32> to vector<8x128xf32>
    %139 = arith.addf %137, %138 : vector<8x128xf32>
    %c0_45 = arith.constant 0 : index
    %c0_46 = arith.constant 0 : index
    %c512 = arith.constant 512 : index
    %140 = vector.load %arg5[%c0_45, %c0_46, %c512] : memref<2x128x768xbf16, #tpu.memory_space<vmem>>, vector<1x128x256xbf16>
    %141 = vector.shape_cast %140 : vector<1x128x256xbf16> to vector<128x256xbf16>
    %c0_47 = arith.constant 0 : index
    %c4_48 = arith.constant 4 : index
    %c0_49 = arith.constant 0 : index
    %142 = vector.load %arg4[%c0_47, %c4_48, %c0_49] : memref<2x8x384xf32, #tpu.memory_space<vmem>>, vector<1x1x256xf32>
    %143 = vector.shape_cast %142 : vector<1x1x256xf32> to vector<1x256xf32>
    %144 = arith.truncf %139 : vector<8x128xf32> to vector<8x128xbf16>
    %cst_50 = arith.constant dense<0.000000e+00> : vector<8x256xf32>
    %145 = tpu.matmul %144, %141, %cst_50 {dimension_numbers = #tpu.dot_dimension_numbers<[1], [0], [0], [1], [0, 0, 1, 1], [], []>} : vector<8x128xbf16>, vector<128x256xbf16>, vector<8x256xf32> -> vector<8x256xf32>
    %146 = vector.broadcast %143 : vector<1x256xf32> to vector<8x256xf32>
    %147 = arith.addf %145, %146 : vector<8x256xf32>
    %148 = arith.mulf %147, %147 : vector<8x256xf32>
    %149 = arith.mulf %147, %148 : vector<8x256xf32>
    %cst_51 = arith.constant 4.471500e-02 : f32
    %150 = vector.broadcast %cst_51 : f32 to vector<8x256xf32>
    %151 = arith.mulf %150, %149 : vector<8x256xf32>
    %152 = arith.addf %147, %151 : vector<8x256xf32>
    %cst_52 = arith.constant 0.797884583 : f32
    %153 = vector.broadcast %cst_52 : f32 to vector<8x256xf32>
    %154 = arith.mulf %153, %152 : vector<8x256xf32>
    %155 = math.tanh %154 : vector<8x256xf32>
    %cst_53 = arith.constant 1.000000e+00 : f32
    %156 = vector.broadcast %cst_53 : f32 to vector<8x256xf32>
    %157 = arith.addf %156, %155 : vector<8x256xf32>
    %cst_54 = arith.constant 5.000000e-01 : f32
    %158 = vector.broadcast %cst_54 : f32 to vector<8x256xf32>
    %159 = arith.mulf %158, %157 : vector<8x256xf32>
    %160 = arith.mulf %147, %159 : vector<8x256xf32>
    %c0_55 = arith.constant 0 : index
    %c0_56 = arith.constant 0 : index
    %c0_57 = arith.constant 0 : index
    %161 = vector.load %arg6[%c0_55, %c0_56, %c0_57] : memref<2x256x128xbf16, #tpu.memory_space<vmem>>, vector<1x256x128xbf16>
    %162 = vector.shape_cast %161 : vector<1x256x128xbf16> to vector<256x128xbf16>
    %c0_58 = arith.constant 0 : index
    %c5_59 = arith.constant 5 : index
    %c0_60 = arith.constant 0 : index
    %163 = vector.load %arg4[%c0_58, %c5_59, %c0_60] : memref<2x8x384xf32, #tpu.memory_space<vmem>>, vector<1x1x128xf32>
    %164 = vector.shape_cast %163 : vector<1x1x128xf32> to vector<1x128xf32>
    %165 = arith.truncf %160 : vector<8x256xf32> to vector<8x256xbf16>
    %cst_61 = arith.constant dense<0.000000e+00> : vector<8x128xf32>
    %166 = tpu.matmul %165, %162, %cst_61 {dimension_numbers = #tpu.dot_dimension_numbers<[1], [0], [0], [1], [0, 0, 1, 1], [], []>} : vector<8x256xbf16>, vector<256x128xbf16>, vector<8x128xf32> -> vector<8x128xf32>
    %167 = vector.broadcast %164 : vector<1x128xf32> to vector<8x128xf32>
    %168 = arith.addf %166, %167 : vector<8x128xf32>
    %169 = arith.addf %168, %139 : vector<8x128xf32>
    %c0_62 = arith.constant 0 : index
    %c6_63 = arith.constant 6 : index
    %c0_64 = arith.constant 0 : index
    %170 = vector.load %arg4[%c0_62, %c6_63, %c0_64] : memref<2x8x384xf32, #tpu.memory_space<vmem>>, vector<1x1x128xf32>
    %171 = vector.shape_cast %170 : vector<1x1x128xf32> to vector<1x128xf32>
    %c0_65 = arith.constant 0 : index
    %c7_66 = arith.constant 7 : index
    %c0_67 = arith.constant 0 : index
    %172 = vector.load %arg4[%c0_65, %c7_66, %c0_67] : memref<2x8x384xf32, #tpu.memory_space<vmem>>, vector<1x1x128xf32>
    %173 = vector.shape_cast %172 : vector<1x1x128xf32> to vector<1x128xf32>
    %cst_68 = arith.constant dense<0.000000e+00> : vector<8xf32>
    %174 = vector.multi_reduction <add>, %169, %cst_68 [1] : vector<8x128xf32> to vector<8xf32>
    %175 = vector.shape_cast %174 : vector<8xf32> to vector<8x1xf32>
    %cst_69 = arith.constant 1.280000e+02 : f32
    %176 = vector.broadcast %cst_69 : f32 to vector<8x1xf32>
    %177 = arith.divf %175, %176 : vector<8x1xf32>
    %178 = vector.broadcast %177 : vector<8x1xf32> to vector<8x128xf32>
    %179 = arith.subf %169, %178 : vector<8x128xf32>
    %180 = arith.mulf %179, %179 : vector<8x128xf32>
    %cst_70 = arith.constant dense<0.000000e+00> : vector<8xf32>
    %181 = vector.multi_reduction <add>, %180, %cst_70 [1] : vector<8x128xf32> to vector<8xf32>
    %182 = vector.shape_cast %181 : vector<8xf32> to vector<8x1xf32>
    %cst_71 = arith.constant 1.280000e+02 : f32
    %183 = vector.broadcast %cst_71 : f32 to vector<8x1xf32>
    %184 = arith.divf %182, %183 : vector<8x1xf32>
    %cst_72 = arith.constant 9.99999996E-13 : f32
    %185 = vector.broadcast %cst_72 : f32 to vector<8x1xf32>
    %186 = arith.addf %184, %185 : vector<8x1xf32>
    %187 = math.rsqrt %186 : vector<8x1xf32>
    %188 = vector.broadcast %187 : vector<8x1xf32> to vector<8x128xf32>
    %189 = arith.mulf %179, %188 : vector<8x128xf32>
    %190 = vector.broadcast %171 : vector<1x128xf32> to vector<8x128xf32>
    %191 = arith.mulf %189, %190 : vector<8x128xf32>
    %192 = vector.broadcast %173 : vector<1x128xf32> to vector<8x128xf32>
    %193 = arith.addf %191, %192 : vector<8x128xf32>
    %c1_73 = arith.constant 1 : index
    %c0_74 = arith.constant 0 : index
    %c0_75 = arith.constant 0 : index
    %194 = vector.load %arg5[%c1_73, %c0_74, %c0_75] : memref<2x128x768xbf16, #tpu.memory_space<vmem>>, vector<1x128x384xbf16>
    %195 = vector.shape_cast %194 : vector<1x128x384xbf16> to vector<128x384xbf16>
    %c1_76 = arith.constant 1 : index
    %c0_77 = arith.constant 0 : index
    %c0_78 = arith.constant 0 : index
    %196 = vector.load %arg4[%c1_76, %c0_77, %c0_78] : memref<2x8x384xf32, #tpu.memory_space<vmem>>, vector<1x1x384xf32>
    %197 = vector.shape_cast %196 : vector<1x1x384xf32> to vector<1x384xf32>
    %198 = arith.truncf %193 : vector<8x128xf32> to vector<8x128xbf16>
    %cst_79 = arith.constant dense<0.000000e+00> : vector<8x384xf32>
    %199 = tpu.matmul %198, %195, %cst_79 {dimension_numbers = #tpu.dot_dimension_numbers<[1], [0], [0], [1], [0, 0, 1, 1], [], []>} : vector<8x128xbf16>, vector<128x384xbf16>, vector<8x384xf32> -> vector<8x384xf32>
    %200 = vector.broadcast %197 : vector<1x384xf32> to vector<8x384xf32>
    %201 = arith.addf %199, %200 : vector<8x384xf32>
    %202 = vector.extract_strided_slice %201 {offsets = [0, 0], sizes = [8, 128], strides = [1, 1]} : vector<8x384xf32> to vector<8x128xf32>
    %cst_80 = arith.constant 1.250000e-01 : f32
    %203 = vector.broadcast %cst_80 : f32 to vector<8x128xf32>
    %204 = arith.mulf %202, %203 : vector<8x128xf32>
    %205 = vector.extract_strided_slice %204 {offsets = [0, 0], sizes = [8, 64], strides = [1, 1]} : vector<8x128xf32> to vector<8x64xf32>
    %206 = vector.extract_strided_slice %204 {offsets = [0, 64], sizes = [8, 64], strides = [1, 1]} : vector<8x128xf32> to vector<8x64xf32>
    %207 = tpu.concatenate %205, %206 in 0 : vector<8x64xf32>, vector<8x64xf32> -> vector<16x64xf32>
    %208 = arith.truncf %207 : vector<16x64xf32> to vector<16x64xbf16>
    %209 = vector.extract_strided_slice %201 {offsets = [0, 128], sizes = [8, 128], strides = [1, 1]} : vector<8x384xf32> to vector<8x128xf32>
    %210 = vector.extract_strided_slice %209 {offsets = [0, 0], sizes = [8, 64], strides = [1, 1]} : vector<8x128xf32> to vector<8x64xf32>
    %211 = vector.extract_strided_slice %209 {offsets = [0, 64], sizes = [8, 64], strides = [1, 1]} : vector<8x128xf32> to vector<8x64xf32>
    %212 = tpu.concatenate %210, %211 in 0 : vector<8x64xf32>, vector<8x64xf32> -> vector<16x64xf32>
    %213 = arith.truncf %212 : vector<16x64xf32> to vector<16x64xbf16>
    %214 = vector.extract_strided_slice %201 {offsets = [0, 256], sizes = [8, 128], strides = [1, 1]} : vector<8x384xf32> to vector<8x128xf32>
    %215 = vector.extract_strided_slice %214 {offsets = [0, 0], sizes = [8, 64], strides = [1, 1]} : vector<8x128xf32> to vector<8x64xf32>
    %216 = vector.extract_strided_slice %214 {offsets = [0, 64], sizes = [8, 64], strides = [1, 1]} : vector<8x128xf32> to vector<8x64xf32>
    %217 = tpu.concatenate %215, %216 in 0 : vector<8x64xf32>, vector<8x64xf32> -> vector<16x64xf32>
    %218 = arith.truncf %217 : vector<16x64xf32> to vector<16x64xbf16>
    %cst_81 = arith.constant dense<0.000000e+00> : vector<16x16xf32>
    %219 = tpu.matmul %208, %213, %cst_81 {dimension_numbers = #tpu.dot_dimension_numbers<[1], [1], [0], [0], [0, 0, 1, 0], [], []>} : vector<16x64xbf16>, vector<16x64xbf16>, vector<16x16xf32> -> vector<16x16xf32>
    %220 = arith.addf %219, %64 : vector<16x16xf32>
    %cst_82 = arith.constant dense<0xFF800000> : vector<16xf32>
    %221 = vector.multi_reduction <maximumf>, %220, %cst_82 [1] : vector<16x16xf32> to vector<16xf32>
    %222 = vector.shape_cast %221 : vector<16xf32> to vector<16x1xf32>
    %223 = vector.broadcast %222 : vector<16x1xf32> to vector<16x16xf32>
    %224 = arith.subf %220, %223 : vector<16x16xf32>
    %225 = math.exp %224 : vector<16x16xf32>
    %cst_83 = arith.constant dense<0.000000e+00> : vector<16xf32>
    %226 = vector.multi_reduction <add>, %225, %cst_83 [1] : vector<16x16xf32> to vector<16xf32>
    %227 = vector.shape_cast %226 : vector<16xf32> to vector<16x1xf32>
    %228 = tpu.reciprocal %227 {approx = true} : vector<16x1xf32> -> vector<16x1xf32>
    %229 = vector.broadcast %228 : vector<16x1xf32> to vector<16x16xf32>
    %230 = arith.mulf %225, %229 : vector<16x16xf32>
    %231 = arith.truncf %230 : vector<16x16xf32> to vector<16x16xbf16>
    %cst_84 = arith.constant dense<0.000000e+00> : vector<16x64xf32>
    %232 = tpu.matmul %231, %218, %cst_84 {dimension_numbers = #tpu.dot_dimension_numbers<[1], [0], [0], [1], [0, 0, 1, 1], [], []>} : vector<16x16xbf16>, vector<16x64xbf16>, vector<16x64xf32> -> vector<16x64xf32>
    %233 = vector.extract_strided_slice %232 {offsets = [0, 0], sizes = [8, 64], strides = [1, 1]} : vector<16x64xf32> to vector<8x64xf32>
    %234 = vector.extract_strided_slice %232 {offsets = [8, 0], sizes = [8, 64], strides = [1, 1]} : vector<16x64xf32> to vector<8x64xf32>
    %235 = tpu.concatenate %233, %234 in 1 : vector<8x64xf32>, vector<8x64xf32> -> vector<8x128xf32>
    %c1_85 = arith.constant 1 : index
    %c0_86 = arith.constant 0 : index
    %c384_87 = arith.constant 384 : index
    %236 = vector.load %arg5[%c1_85, %c0_86, %c384_87] : memref<2x128x768xbf16, #tpu.memory_space<vmem>>, vector<1x128x128xbf16>
    %237 = vector.shape_cast %236 : vector<1x128x128xbf16> to vector<128x128xbf16>
    %c1_88 = arith.constant 1 : index
    %c1_89 = arith.constant 1 : index
    %c0_90 = arith.constant 0 : index
    %238 = vector.load %arg4[%c1_88, %c1_89, %c0_90] : memref<2x8x384xf32, #tpu.memory_space<vmem>>, vector<1x1x128xf32>
    %239 = vector.shape_cast %238 : vector<1x1x128xf32> to vector<1x128xf32>
    %240 = arith.truncf %235 : vector<8x128xf32> to vector<8x128xbf16>
    %cst_91 = arith.constant dense<0.000000e+00> : vector<8x128xf32>
    %241 = tpu.matmul %240, %237, %cst_91 {dimension_numbers = #tpu.dot_dimension_numbers<[1], [0], [0], [1], [0, 0, 1, 1], [], []>} : vector<8x128xbf16>, vector<128x128xbf16>, vector<8x128xf32> -> vector<8x128xf32>
    %242 = vector.broadcast %239 : vector<1x128xf32> to vector<8x128xf32>
    %243 = arith.addf %241, %242 : vector<8x128xf32>
    %244 = arith.addf %243, %193 : vector<8x128xf32>
    %c1_92 = arith.constant 1 : index
    %c2_93 = arith.constant 2 : index
    %c0_94 = arith.constant 0 : index
    %245 = vector.load %arg4[%c1_92, %c2_93, %c0_94] : memref<2x8x384xf32, #tpu.memory_space<vmem>>, vector<1x1x128xf32>
    %246 = vector.shape_cast %245 : vector<1x1x128xf32> to vector<1x128xf32>
    %c1_95 = arith.constant 1 : index
    %c3_96 = arith.constant 3 : index
    %c0_97 = arith.constant 0 : index
    %247 = vector.load %arg4[%c1_95, %c3_96, %c0_97] : memref<2x8x384xf32, #tpu.memory_space<vmem>>, vector<1x1x128xf32>
    %248 = vector.shape_cast %247 : vector<1x1x128xf32> to vector<1x128xf32>
    %cst_98 = arith.constant dense<0.000000e+00> : vector<8xf32>
    %249 = vector.multi_reduction <add>, %244, %cst_98 [1] : vector<8x128xf32> to vector<8xf32>
    %250 = vector.shape_cast %249 : vector<8xf32> to vector<8x1xf32>
    %cst_99 = arith.constant 1.280000e+02 : f32
    %251 = vector.broadcast %cst_99 : f32 to vector<8x1xf32>
    %252 = arith.divf %250, %251 : vector<8x1xf32>
    %253 = vector.broadcast %252 : vector<8x1xf32> to vector<8x128xf32>
    %254 = arith.subf %244, %253 : vector<8x128xf32>
    %255 = arith.mulf %254, %254 : vector<8x128xf32>
    %cst_100 = arith.constant dense<0.000000e+00> : vector<8xf32>
    %256 = vector.multi_reduction <add>, %255, %cst_100 [1] : vector<8x128xf32> to vector<8xf32>
    %257 = vector.shape_cast %256 : vector<8xf32> to vector<8x1xf32>
    %cst_101 = arith.constant 1.280000e+02 : f32
    %258 = vector.broadcast %cst_101 : f32 to vector<8x1xf32>
    %259 = arith.divf %257, %258 : vector<8x1xf32>
    %cst_102 = arith.constant 9.99999996E-13 : f32
    %260 = vector.broadcast %cst_102 : f32 to vector<8x1xf32>
    %261 = arith.addf %259, %260 : vector<8x1xf32>
    %262 = math.rsqrt %261 : vector<8x1xf32>
    %263 = vector.broadcast %262 : vector<8x1xf32> to vector<8x128xf32>
    %264 = arith.mulf %254, %263 : vector<8x128xf32>
    %265 = vector.broadcast %246 : vector<1x128xf32> to vector<8x128xf32>
    %266 = arith.mulf %264, %265 : vector<8x128xf32>
    %267 = vector.broadcast %248 : vector<1x128xf32> to vector<8x128xf32>
    %268 = arith.addf %266, %267 : vector<8x128xf32>
    %c1_103 = arith.constant 1 : index
    %c0_104 = arith.constant 0 : index
    %c512_105 = arith.constant 512 : index
    %269 = vector.load %arg5[%c1_103, %c0_104, %c512_105] : memref<2x128x768xbf16, #tpu.memory_space<vmem>>, vector<1x128x256xbf16>
    %270 = vector.shape_cast %269 : vector<1x128x256xbf16> to vector<128x256xbf16>
    %c1_106 = arith.constant 1 : index
    %c4_107 = arith.constant 4 : index
    %c0_108 = arith.constant 0 : index
    %271 = vector.load %arg4[%c1_106, %c4_107, %c0_108] : memref<2x8x384xf32, #tpu.memory_space<vmem>>, vector<1x1x256xf32>
    %272 = vector.shape_cast %271 : vector<1x1x256xf32> to vector<1x256xf32>
    %273 = arith.truncf %268 : vector<8x128xf32> to vector<8x128xbf16>
    %cst_109 = arith.constant dense<0.000000e+00> : vector<8x256xf32>
    %274 = tpu.matmul %273, %270, %cst_109 {dimension_numbers = #tpu.dot_dimension_numbers<[1], [0], [0], [1], [0, 0, 1, 1], [], []>} : vector<8x128xbf16>, vector<128x256xbf16>, vector<8x256xf32> -> vector<8x256xf32>
    %275 = vector.broadcast %272 : vector<1x256xf32> to vector<8x256xf32>
    %276 = arith.addf %274, %275 : vector<8x256xf32>
    %277 = arith.mulf %276, %276 : vector<8x256xf32>
    %278 = arith.mulf %276, %277 : vector<8x256xf32>
    %cst_110 = arith.constant 4.471500e-02 : f32
    %279 = vector.broadcast %cst_110 : f32 to vector<8x256xf32>
    %280 = arith.mulf %279, %278 : vector<8x256xf32>
    %281 = arith.addf %276, %280 : vector<8x256xf32>
    %cst_111 = arith.constant 0.797884583 : f32
    %282 = vector.broadcast %cst_111 : f32 to vector<8x256xf32>
    %283 = arith.mulf %282, %281 : vector<8x256xf32>
    %284 = math.tanh %283 : vector<8x256xf32>
    %cst_112 = arith.constant 1.000000e+00 : f32
    %285 = vector.broadcast %cst_112 : f32 to vector<8x256xf32>
    %286 = arith.addf %285, %284 : vector<8x256xf32>
    %cst_113 = arith.constant 5.000000e-01 : f32
    %287 = vector.broadcast %cst_113 : f32 to vector<8x256xf32>
    %288 = arith.mulf %287, %286 : vector<8x256xf32>
    %289 = arith.mulf %276, %288 : vector<8x256xf32>
    %c1_114 = arith.constant 1 : index
    %c0_115 = arith.constant 0 : index
    %c0_116 = arith.constant 0 : index
    %290 = vector.load %arg6[%c1_114, %c0_115, %c0_116] : memref<2x256x128xbf16, #tpu.memory_space<vmem>>, vector<1x256x128xbf16>
    %291 = vector.shape_cast %290 : vector<1x256x128xbf16> to vector<256x128xbf16>
    %c1_117 = arith.constant 1 : index
    %c5_118 = arith.constant 5 : index
    %c0_119 = arith.constant 0 : index
    %292 = vector.load %arg4[%c1_117, %c5_118, %c0_119] : memref<2x8x384xf32, #tpu.memory_space<vmem>>, vector<1x1x128xf32>
    %293 = vector.shape_cast %292 : vector<1x1x128xf32> to vector<1x128xf32>
    %294 = arith.truncf %289 : vector<8x256xf32> to vector<8x256xbf16>
    %cst_120 = arith.constant dense<0.000000e+00> : vector<8x128xf32>
    %295 = tpu.matmul %294, %291, %cst_120 {dimension_numbers = #tpu.dot_dimension_numbers<[1], [0], [0], [1], [0, 0, 1, 1], [], []>} : vector<8x256xbf16>, vector<256x128xbf16>, vector<8x128xf32> -> vector<8x128xf32>
    %296 = vector.broadcast %293 : vector<1x128xf32> to vector<8x128xf32>
    %297 = arith.addf %295, %296 : vector<8x128xf32>
    %298 = arith.addf %297, %268 : vector<8x128xf32>
    %c1_121 = arith.constant 1 : index
    %c6_122 = arith.constant 6 : index
    %c0_123 = arith.constant 0 : index
    %299 = vector.load %arg4[%c1_121, %c6_122, %c0_123] : memref<2x8x384xf32, #tpu.memory_space<vmem>>, vector<1x1x128xf32>
    %300 = vector.shape_cast %299 : vector<1x1x128xf32> to vector<1x128xf32>
    %c1_124 = arith.constant 1 : index
    %c7_125 = arith.constant 7 : index
    %c0_126 = arith.constant 0 : index
    %301 = vector.load %arg4[%c1_124, %c7_125, %c0_126] : memref<2x8x384xf32, #tpu.memory_space<vmem>>, vector<1x1x128xf32>
    %302 = vector.shape_cast %301 : vector<1x1x128xf32> to vector<1x128xf32>
    %cst_127 = arith.constant dense<0.000000e+00> : vector<8xf32>
    %303 = vector.multi_reduction <add>, %298, %cst_127 [1] : vector<8x128xf32> to vector<8xf32>
    %304 = vector.shape_cast %303 : vector<8xf32> to vector<8x1xf32>
    %cst_128 = arith.constant 1.280000e+02 : f32
    %305 = vector.broadcast %cst_128 : f32 to vector<8x1xf32>
    %306 = arith.divf %304, %305 : vector<8x1xf32>
    %307 = vector.broadcast %306 : vector<8x1xf32> to vector<8x128xf32>
    %308 = arith.subf %298, %307 : vector<8x128xf32>
    %309 = arith.mulf %308, %308 : vector<8x128xf32>
    %cst_129 = arith.constant dense<0.000000e+00> : vector<8xf32>
    %310 = vector.multi_reduction <add>, %309, %cst_129 [1] : vector<8x128xf32> to vector<8xf32>
    %311 = vector.shape_cast %310 : vector<8xf32> to vector<8x1xf32>
    %cst_130 = arith.constant 1.280000e+02 : f32
    %312 = vector.broadcast %cst_130 : f32 to vector<8x1xf32>
    %313 = arith.divf %311, %312 : vector<8x1xf32>
    %cst_131 = arith.constant 9.99999996E-13 : f32
    %314 = vector.broadcast %cst_131 : f32 to vector<8x1xf32>
    %315 = arith.addf %313, %314 : vector<8x1xf32>
    %316 = math.rsqrt %315 : vector<8x1xf32>
    %317 = vector.broadcast %316 : vector<8x1xf32> to vector<8x128xf32>
    %318 = arith.mulf %308, %317 : vector<8x128xf32>
    %319 = vector.broadcast %300 : vector<1x128xf32> to vector<8x128xf32>
    %320 = arith.mulf %318, %319 : vector<8x128xf32>
    %321 = vector.broadcast %302 : vector<1x128xf32> to vector<8x128xf32>
    %322 = arith.addf %320, %321 : vector<8x128xf32>
    %c0_132 = arith.constant 0 : index
    %c0_133 = arith.constant 0 : index
    %323 = vector.load %arg7[%c0_132, %c0_133] : memref<128x640xbf16, #tpu.memory_space<vmem>>, vector<128x128xbf16>
    %c19 = arith.constant 19 : index
    %c0_134 = arith.constant 0 : index
    %324 = vector.load %arg3[%c19, %c0_134] : memref<24x512xf32, #tpu.memory_space<vmem>>, vector<1x128xf32>
    %325 = arith.truncf %322 : vector<8x128xf32> to vector<8x128xbf16>
    %cst_135 = arith.constant dense<0.000000e+00> : vector<8x128xf32>
    %326 = tpu.matmul %325, %323, %cst_135 {dimension_numbers = #tpu.dot_dimension_numbers<[1], [0], [0], [1], [0, 0, 1, 1], [], []>} : vector<8x128xbf16>, vector<128x128xbf16>, vector<8x128xf32> -> vector<8x128xf32>
    %327 = vector.broadcast %324 : vector<1x128xf32> to vector<8x128xf32>
    %328 = arith.addf %326, %327 : vector<8x128xf32>
    %329 = arith.mulf %328, %328 : vector<8x128xf32>
    %330 = arith.mulf %328, %329 : vector<8x128xf32>
    %cst_136 = arith.constant 4.471500e-02 : f32
    %331 = vector.broadcast %cst_136 : f32 to vector<8x128xf32>
    %332 = arith.mulf %331, %330 : vector<8x128xf32>
    %333 = arith.addf %328, %332 : vector<8x128xf32>
    %cst_137 = arith.constant 0.797884583 : f32
    %334 = vector.broadcast %cst_137 : f32 to vector<8x128xf32>
    %335 = arith.mulf %334, %333 : vector<8x128xf32>
    %336 = math.tanh %335 : vector<8x128xf32>
    %cst_138 = arith.constant 1.000000e+00 : f32
    %337 = vector.broadcast %cst_138 : f32 to vector<8x128xf32>
    %338 = arith.addf %337, %336 : vector<8x128xf32>
    %cst_139 = arith.constant 5.000000e-01 : f32
    %339 = vector.broadcast %cst_139 : f32 to vector<8x128xf32>
    %340 = arith.mulf %339, %338 : vector<8x128xf32>
    %341 = arith.mulf %328, %340 : vector<8x128xf32>
    %c20 = arith.constant 20 : index
    %c0_140 = arith.constant 0 : index
    %342 = vector.load %arg3[%c20, %c0_140] : memref<24x512xf32, #tpu.memory_space<vmem>>, vector<1x128xf32>
    %c21 = arith.constant 21 : index
    %c0_141 = arith.constant 0 : index
    %343 = vector.load %arg3[%c21, %c0_141] : memref<24x512xf32, #tpu.memory_space<vmem>>, vector<1x128xf32>
    %cst_142 = arith.constant dense<0.000000e+00> : vector<8xf32>
    %344 = vector.multi_reduction <add>, %341, %cst_142 [1] : vector<8x128xf32> to vector<8xf32>
    %345 = vector.shape_cast %344 : vector<8xf32> to vector<8x1xf32>
    %cst_143 = arith.constant 1.280000e+02 : f32
    %346 = vector.broadcast %cst_143 : f32 to vector<8x1xf32>
    %347 = arith.divf %345, %346 : vector<8x1xf32>
    %348 = vector.broadcast %347 : vector<8x1xf32> to vector<8x128xf32>
    %349 = arith.subf %341, %348 : vector<8x128xf32>
    %350 = arith.mulf %349, %349 : vector<8x128xf32>
    %cst_144 = arith.constant dense<0.000000e+00> : vector<8xf32>
    %351 = vector.multi_reduction <add>, %350, %cst_144 [1] : vector<8x128xf32> to vector<8xf32>
    %352 = vector.shape_cast %351 : vector<8xf32> to vector<8x1xf32>
    %cst_145 = arith.constant 1.280000e+02 : f32
    %353 = vector.broadcast %cst_145 : f32 to vector<8x1xf32>
    %354 = arith.divf %352, %353 : vector<8x1xf32>
    %cst_146 = arith.constant 9.99999996E-13 : f32
    %355 = vector.broadcast %cst_146 : f32 to vector<8x1xf32>
    %356 = arith.addf %354, %355 : vector<8x1xf32>
    %357 = math.rsqrt %356 : vector<8x1xf32>
    %358 = vector.broadcast %357 : vector<8x1xf32> to vector<8x128xf32>
    %359 = arith.mulf %349, %358 : vector<8x128xf32>
    %360 = vector.broadcast %342 : vector<1x128xf32> to vector<8x128xf32>
    %361 = arith.mulf %359, %360 : vector<8x128xf32>
    %362 = vector.broadcast %343 : vector<1x128xf32> to vector<8x128xf32>
    %363 = arith.addf %361, %362 : vector<8x128xf32>
    %c0_147 = arith.constant 0 : index
    %c128 = arith.constant 128 : index
    %364 = vector.load %arg7[%c0_147, %c128] : memref<128x640xbf16, #tpu.memory_space<vmem>>, vector<128x512xbf16>
    %c22 = arith.constant 22 : index
    %c0_148 = arith.constant 0 : index
    %365 = vector.load %arg3[%c22, %c0_148] : memref<24x512xf32, #tpu.memory_space<vmem>>, vector<1x512xf32>
    %366 = arith.truncf %363 : vector<8x128xf32> to vector<8x128xbf16>
    %cst_149 = arith.constant dense<0.000000e+00> : vector<8x512xf32>
    %367 = tpu.matmul %366, %364, %cst_149 {dimension_numbers = #tpu.dot_dimension_numbers<[1], [0], [0], [1], [0, 0, 1, 1], [], []>} : vector<8x128xbf16>, vector<128x512xbf16>, vector<8x512xf32> -> vector<8x512xf32>
    %368 = vector.broadcast %365 : vector<1x512xf32> to vector<8x512xf32>
    %369 = arith.addf %367, %368 : vector<8x512xf32>
    %c0_150 = arith.constant 0 : index
    %c0_151 = arith.constant 0 : index
    %370 = vector.load %arg8[%c0_150, %c0_151] : memref<8x512xf32, #tpu.memory_space<vmem>>, vector<8x512xf32>
    tpu.vector_store %arg8[%c0_150, %c0_151], %369 {strides = array<i32>} : memref<8x512xf32, #tpu.memory_space<vmem>>, vector<8x512xf32>,
    return
  }
  func.func @transform_0(%arg0: i32, %arg1: memref<2x8xi32, #tpu.memory_space<smem>>) -> (i32, i32) {
    %c0_i32 = arith.constant 0 : i32
    %c0_i32_0 = arith.constant 0 : i32
    %c0_i32_1 = arith.constant 0 : i32
    return %c0_i32, %c0_i32_0 : i32, i32
  }
  func.func @transform_1(%arg0: i32, %arg1: memref<2x8xi32, #tpu.memory_space<smem>>) -> (i32, i32) {
    %c0_i32 = arith.constant 0 : i32
    %c0_i32_0 = arith.constant 0 : i32
    %c0_i32_1 = arith.constant 0 : i32
    return %c0_i32, %c0_i32_0 : i32, i32
  }
  func.func @transform_2(%arg0: i32, %arg1: memref<2x8xi32, #tpu.memory_space<smem>>) -> (i32, i32, i32) {
    %c0_i32 = arith.constant 0 : i32
    %c0_i32_0 = arith.constant 0 : i32
    %c0_i32_1 = arith.constant 0 : i32
    %c0_i32_2 = arith.constant 0 : i32
    return %c0_i32, %c0_i32_0, %c0_i32_1 : i32, i32, i32
  }
  func.func @transform_3(%arg0: i32, %arg1: memref<2x8xi32, #tpu.memory_space<smem>>) -> (i32, i32, i32) {
    %c0_i32 = arith.constant 0 : i32
    %c0_i32_0 = arith.constant 0 : i32
    %c0_i32_1 = arith.constant 0 : i32
    %c0_i32_2 = arith.constant 0 : i32
    return %c0_i32, %c0_i32_0, %c0_i32_1 : i32, i32, i32
  }
  func.func @transform_4(%arg0: i32, %arg1: memref<2x8xi32, #tpu.memory_space<smem>>) -> (i32, i32, i32) {
    %c0_i32 = arith.constant 0 : i32
    %c0_i32_0 = arith.constant 0 : i32
    %c0_i32_1 = arith.constant 0 : i32
    %c0_i32_2 = arith.constant 0 : i32
    return %c0_i32, %c0_i32_0, %c0_i32_1 : i32, i32, i32
  }
  func.func @transform_5(%arg0: i32, %arg1: memref<2x8xi32, #tpu.memory_space<smem>>) -> (i32, i32) {
    %c0_i32 = arith.constant 0 : i32
    %c0_i32_0 = arith.constant 0 : i32
    %c0_i32_1 = arith.constant 0 : i32
    return %c0_i32, %c0_i32_0 : i32, i32
  }
  func.func @transform_6(%arg0: i32, %arg1: memref<2x8xi32, #tpu.memory_space<smem>>) -> (i32, i32) {
    %c0_i32 = arith.constant 0 : i32
    %c0_i32_0 = arith.constant 0 : i32
    return %arg0, %c0_i32 : i32, i32
  }
}

</mosaic_0001>

<bundles_post_ra>
// kernel: bert_forward.1
= control target key start
LH: loop header
LB: loop body
LE: loop exit
PB: predicated region body
PF: predicated region fallthrough
CT: control target
= control target key end

     0   :  { %s4458_s0 = inlined_call_operand.vmem [shape: s32[2,8], index: 0, kind: input, shape index: {}]   ;;  %s4459_s1 = inlined_call_operand.hbm [shape: f32[512,128], index: 1, kind: input, shape index: {}]   ;;  %s4460_s2 = inlined_call_operand.hbm [shape: f32[24,512], index: 2, kind: input, shape index: {}]   ;;  %s4461_s3 = inlined_call_operand.hbm [shape: f32[2,8,384], index: 3, kind: input, shape index: {}]   ;;  %s4462_s4 = inlined_call_operand.hbm [shape: bf16[2,128,768], index: 4, kind: input, shape index: {}]   ;;  %s4463_s5 = inlined_call_operand.hbm [shape: bf16[2,256,128], index: 5, kind: input, shape index: {}]   ;;  %s4464_s6 = inlined_call_operand.hbm [shape: bf16[128,640], index: 6, kind: input, shape index: {}]   ;;  %s4465_s7 = inlined_call_operand.hbm [shape: f32[16,512], index: 7, kind: output, shape index: {}]  }
   0x1   :  { %s12_s26 = sshll.u32 %s4458_s0, 4  ;;  %s13_s26 = int_to_ptr.vmem [resolvable:$true] %s12_s26 }
   0x2   :  { %s3776_s27 = scalar_lea.vmem %s13_s26, 32  ;;  %p3781_p1 = scmp.lt.s32.totalorder %s13_s26, %s13_s26 }
   0x3   :  { %p3777_p0 = scmp.ne.s32.totalorder %s13_s26, %s3776_s27  ;;  %p3782_p2 = scmp.lt.s32.totalorder %s3776_s27, %s3776_s27 }
   0x5   :  { %p3783_p3 = por %p3782_p2, %p3781_p1 }
   0x7   :  { %p3784_p4 = pnand %p3783_p3, %p3777_p0 }
   0x9   :  { %3787 = shalt.err (!%p3784_p4)  }
   0xa   :  { %s4024_s28 = smov [#allocation3]  }
   0xb   :  { %15 = dma.vmem_to_smem %s13_s26, 32, %s4024_s28, [#allocation2] }
   0xc   :  { %3986 = dma.done.wait [#allocation2], 32 }
   0xd   :  { %3987 = vsyncadd [#allocation2], 4294967264 }
   0xe   :  { %17 = sfence }
   0xf   :  { %18 = vsyncpa [#allocation5], 0 }
  0x10   :  { %19 = vsyncpa [#allocation8], 0 }
  0x11   :  { %20 = vsyncpa [#allocation11], 0 }
  0x12   :  { %21 = vsyncpa [#allocation14], 0 }
  0x13   :  { %22 = vsyncpa [#allocation6], 0 }
  0x14   :  { %24 = vsyncpa [#allocation6 + $0x1], 0  ;;  %s4091_s0 = smov 0   ;;  %s4093_s29 = smov 0  }
  0x15   :  { %s4095_s30 = smov 0   ;;  %s4097_s8 = smov 0  }
  0x16 LB: > { %s4112_s9 = sadd.s32 4294967295, %s4022_s8   ;;  %s2911_s10 = sadd.s32 4294967294, %s4022_s8   ;;  %s4022_s8 = sphi %s4097_s8, %s4485_s8   ;;  %s4018_s30 = sphi %s4095_s30, %s4484_s30   ;;  %s4014_s29 = sphi %s4093_s29, %s4483_s29   ;;  %s4010_s0 = sphi %s4091_s0, %s4482_s0  }
  0x17   : > { %s4116_s11 = sadd.s32 1, %s4022_s8   ;;  %s163_s12 = sadd.s32 1, %s4018_s30 }
  0x18   : > { %s160_s13 = ssub.s32 %s4022_s8, %s4116_s11  ;;  %p173_p5 = scmp.ne.s32.totalorder %s4018_s30, %s4014_s29 }
  0x19   : > { %p161_p6 = scmp.eq.s32.totalorder %s160_s13, 0  ;;  %p174_p7 = scmp.eq.s32.totalorder %s4112_s9, 1 }
  0x1a   : > { %p179_p8 = scmp.ne.s32.totalorder %s4014_s29, %s4010_s0  ;;  %p180_p9 = scmp.eq.s32.totalorder %s2911_s10, 1 }
  0x1b   : > { %s4127_s14 = scalar_select %p161_p6, %s4018_s30, %s163_s12  }
  0x1c   : > { %p4129_p10 = por %p174_p7, %p173_p5  ;;  %p4133_p11 = por %p180_p9, %p179_p8 }
  0x1d   : > { %p2912_p12 = scmp.ge.s32.totalorder %s4022_s8, 1  ;;  %p187_p13 = scmp.lt.s32.totalorder %s4022_s8, 3 }
  0x1e   : > { %p4467_p0 = scmp.eq.s32.totalorder %s4112_s9, 0  ;;  %s4025_s18 = smov [#allocation7]  }
  0x1f   : > { %p4140_p1 = pnand %p2912_p12, %p187_p13  ;;  %s212_s19 = sshll.u32 %s4025_s18, 4  ;;  %s213_s19 = int_to_ptr.vmem [resolvable:$true] %s212_s19 }
  0x20   : > { %s4026_s21 = smov [#allocation10]   ;;  %s3799_s24 = scalar_lea.vmem %s213_s19, 1536 }
  0x21   : > { %p3431_p2 = pneg %p4140_p1  ;;  %s238_s22 = sshll.u32 %s4026_s21, 4  ;;  %s239_s22 = int_to_ptr.vmem [resolvable:$true] %s238_s22 }
  0x22   : > { %p3800_p5 = scmp.ne.s32.totalorder %s213_s19, %s3799_s24  ;;  %p3807_p8 = scmp.lt.s32.totalorder %s213_s19, %s213_s19 }
  0x23   : > { %p4148_p3 = pnand %p4467_p0, %p3431_p2  ;;  %p3808_p9 = scmp.lt.s32.totalorder %s3799_s24, %s3799_s24 }
  0x25   : > { %p4154_p4 = pneg %p4148_p3  ;;  %p3809_p12 = por %p3808_p9, %p3807_p8 }
  0x27   : > { %p3802_p6 = pnand %p3800_p5, %p4154_p4 }
  0x29   : > { %p3803_p7 = pneg %p3802_p6 }
  0x2b   : > { %p3810_p13 = pnand %p3809_p12, %p3803_p7 }
  0x2d   : > { %3813 = shalt.err (!%p3810_p13)
}
  0x2e   : > { %s4027_s25 = smov 512   ;;  %s4028_s26 = smov 32  }
  0x2f   : > { %3437 = dma.hbm_to_vmem [thread:$0]  (!%p4148_p3), %s4460_s2, 1536, %s213_s19, [#allocation8], %s4027_s25, %s4027_s25, %s4028_s26  }
  0x30   : > { %s4029_s10 = smov [#allocation4]   ;;  %s3825_s13 = scalar_lea.vmem %s239_s22, 12288 }
  0x31   : > { %s199_s12 = sshll.u32 %s4029_s10, 4  ;;  %p3826_p2 = scmp.ne.s32.totalorder %s239_s22, %s3825_s13  ;;  %s200_s12 = int_to_ptr.vmem [resolvable:$true] %s199_s12 }
  0x32   : > { %p3833_p8 = scmp.lt.s32.totalorder %s239_s22, %s239_s22  ;;  %p3834_p7 = scmp.lt.s32.totalorder %s3825_s13, %s3825_s13 }
  0x33   : > { %p3828_p5 = pnand %p3826_p2, %p4154_p4 }
  0x34   : > { %p3835_p9 = por %p3834_p7, %p3833_p8 }
  0x35   : > { %p3829_p6 = pneg %p3828_p5 }
  0x37   : > { %p3836_p12 = pnand %p3835_p9, %p3829_p6 }
  0x39   : > { %3839 = shalt.err (!%p3836_p12)
}
  0x3a   : > { %s4466_s18 = smov 384   ;;  %s4031_s21 = smov 24  }
  0x3b   : > { %3443 = dma.hbm_to_vmem [thread:$0]  (!%p4148_p3), %s4462_s4, 12288, %s239_s22, [#allocation11], %s4466_s18, %s4466_s18, %s4031_s21  }
  0x3c   : > { %s3851_s25 = scalar_lea.vmem %s200_s12, 8192  ;;  %p3859_p6 = scmp.lt.s32.totalorder %s200_s12, %s200_s12 }
  0x3d   : > { %p3852_p13 = scmp.ne.s32.totalorder %s200_s12, %s3851_s25  ;;  %p3860_p8 = scmp.lt.s32.totalorder %s3851_s25, %s3851_s25 }
  0x3f   : > { %p3854_p2 = pnand %p3852_p13, %p4154_p4  ;;  %p3861_p7 = por %p3860_p8, %p3859_p6 }
  0x41   : > { %p3855_p5 = pneg %p3854_p2 }
  0x43   : > { %p3862_p9 = pnand %p3861_p7, %p3855_p5 }
  0x45   : > { %3865 = shalt.err (!%p3862_p9)
}
  0x46   : > { %s4032_s26 = smov 128   ;;  %s4033_s27 = smov 8  }
  0x47   : > { %3434 = dma.hbm_to_vmem [thread:$0]  (!%p4148_p3), %s4459_s1, 8192, %s200_s12, [#allocation5], %s4032_s26, %s4032_s26, %s4033_s27  }
  0x48   : > { %s4034_s22 = smov [#allocation9]   ;;  %s4035_s19 = smov [#allocation12]  }
  0x49   : > { %s225_s13 = sshll.u32 %s4034_s22, 4  ;;  %s251_s24 = sshll.u32 %s4035_s19, 4  ;;  %s226_s13 = int_to_ptr.vmem [resolvable:$true] %s225_s13  ;;  %s252_s24 = int_to_ptr.vmem [resolvable:$true] %s251_s24 }
  0x4a   : > { %s3877_s18 = scalar_lea.vmem %s226_s13, 768  ;;  %p3885_p5 = scmp.lt.s32.totalorder %s226_s13, %s226_s13 }
  0x4b   : > { %p3878_p12 = scmp.ne.s32.totalorder %s226_s13, %s3877_s18  ;;  %p3886_p6 = scmp.lt.s32.totalorder %s3877_s18, %s3877_s18 }
  0x4d   : > { %p3880_p13 = pnand %p3878_p12, %p4154_p4  ;;  %p3887_p8 = por %p3886_p6, %p3885_p5 }
  0x4f   : > { %p3881_p2 = pneg %p3880_p13 }
  0x51   : > { %p3888_p7 = pnand %p3887_p8, %p3881_p2 }
  0x53   : > { %3891 = shalt.err (!%p3888_p7)
}
  0x54   : > { %s4473_s25 = smov 384   ;;  %s3903_s27 = scalar_lea.vmem %s252_s24, 4096 }
  0x55   : > { %3440 = dma.hbm_to_vmem [thread:$0]  (!%p4148_p3), %s4461_s3, 768, %s226_s13, [#allocation8], %s4473_s25, %s4473_s25, %s4031_s21  }
  0x56   : > { %p3904_p9 = scmp.ne.s32.totalorder %s252_s24, %s3903_s27  ;;  %p3911_p0 = scmp.lt.s32.totalorder %s252_s24, %s252_s24 }
  0x57   : > { %p3912_p5 = scmp.lt.s32.totalorder %s3903_s27, %s3903_s27 }
  0x58   : > { %p3906_p12 = pnand %p3904_p9, %p4154_p4 }
  0x59   : > { %p3913_p2 = por %p3912_p5, %p3911_p0 }
  0x5a   : > { %p3907_p13 = pneg %p3906_p12 }
  0x5c   : > { %p3914_p6 = pnand %p3913_p2, %p3907_p13 }
  0x5e   : > { %3917 = shalt.err (!%p3914_p6)
}
  0x5f   : > { %s4036_s18 = smov 64   ;;  %s4037_s28 = smov 4  }
  0x60   : > { %3446 = dma.hbm_to_vmem [thread:$0]  (!%p4148_p3), %s4463_s5, 4096, %s252_s24, [#allocation11], %s4036_s18, %s4036_s18, %s4037_s28  }
  0x61   : > { %s4038_s21 = smov [#allocation13]  }
  0x62   : > { %s264_s13 = sshll.u32 %s4038_s21, 4  ;;  %s265_s13 = int_to_ptr.vmem [resolvable:$true] %s264_s13 }
  0x63   : > { %s3929_s19 = scalar_lea.vmem %s265_s13, 5120  ;;  %p3937_p0 = scmp.lt.s32.totalorder %s265_s13, %s265_s13 }
  0x64   : > { %p3930_p8 = scmp.ne.s32.totalorder %s265_s13, %s3929_s19  ;;  %p3938_p12 = scmp.lt.s32.totalorder %s3929_s19, %s3929_s19 }
  0x66   : > { %p3932_p7 = pnand %p3930_p8, %p4154_p4  ;;  %p3939_p13 = por %p3938_p12, %p3937_p0 }
  0x68   : > { %p3933_p9 = pneg %p3932_p7 }
  0x6a   : > { %p3940_p5 = pnand %p3939_p13, %p3933_p9 }
  0x6c   : > { %3943 = shalt.err (!%p3940_p5)
}
  0x6d   : > { %s4039_s25 = smov 320   ;;  %s4040_s12 = smov 20  }
  0x6e   : > { %3449 = dma.hbm_to_vmem [thread:$0]  (!%p4148_p3), %s4464_s6, 5120, %s265_s13, [#allocation14], %s4039_s25, %s4039_s25, %s4040_s12  }
  0x6f   : > { %280 = sbr.rel (%p4140_p1) target bundleno = 6204 (0x183c), region = 44  ;;  %p4474_p2 = scmp.eq.s32.totalorder (!%p4140_p1), %s4112_s9, 0 }
  0x74   : > { %3989 = dma.done.wait (%p4474_p2), [#allocation5], 8192   ;;  %p4475_p4 = pmov %p4474_p2 }
  0x75   : > { %p4476_p6 = pmov %p4474_p2 }
  0x76   : > { %3991 = vsyncadd (%p4475_p4), [#allocation5], 4294959104 }
  0x77   : > { %3993 = dma.done.wait (%p4476_p6), [#allocation8], 2304   ;;  %p4477_p8 = pmov %p4474_p2 }
  0x78   : > { %p4478_p7 = pmov %p4474_p2 }
  0x79   : > { %3995 = vsyncadd (%p4477_p8), [#allocation8], 4294964992 }
  0x7a   : > { %3997 = dma.done.wait (%p4478_p7), [#allocation11], 16384   ;;  %p4479_p3 = pmov %p4474_p2 }
  0x7b   : > { %p4480_p1 = pmov %p4474_p2 }
  0x7c   : > { %3999 = vsyncadd (%p4479_p3), [#allocation11], 4294950912 }
  0x7d   : > { %4001 = dma.done.wait (%p4480_p1), [#allocation14], 5120   ;;  %p4481_p9 = pmov %p4480_p1 }
  0x7e   : > { %s4225_s17 = sshll.u32 %s4112_s9, 7  ;;  %v412_v0 = vld [vmem:[#allocation4 + $0xf8] sm:$0xff]  ;;  %v411_v4 = vld [vmem:[#allocation4 + $0xf0] sm:$0xff]  ;;  %v410_v8 = vld [vmem:[#allocation4 + $0xe8] sm:$0xff]  ;;  %vm350_vm0 = vcmask 1040384   ;;  %vm352_vm1 = vcmask 1041408   ;;  %v364_v51 = vlaneseq }
  0x7f   : > { %4003 = vsyncadd (%p4481_p9), [#allocation14], 4294962176  ;;  %s329_s20 = sadd.s32 1, %s4225_s17  ;;  %s4229_s23 = sld [smem:[#allocation3 + %s4225_s17]]  ;;  %v444_v1 = vld [vmem:[#allocation4 + $0x1f8] sm:$0xff]  ;;  %3114 = vmatprep.subr.mxu0 %v412_v0  ;;  %v443_v5 = vld [vmem:[#allocation4 + $0x1f0] sm:$0xff] }
  0x80   : > { %s4231_s24 = sld [smem:[#allocation3 + %s329_s20]]  ;;  %s332_s18 = sadd.s32 2, %s4225_s17  ;;  %v396_v2 = vld [vmem:[#allocation4 + $0x78] sm:$0xff]  ;;  %3149 = vmatprep.subr.mxu1 %v444_v1  ;;  %v395_v6 = vld [vmem:[#allocation4 + $0x70] sm:$0xff]  ;;  %v442_v9 = vld [vmem:[#allocation4 + $0x1e8] sm:$0xff]  ;;  %vm354_vm2 = vcmask 1042432  }
  0x81   : > { %s4234_s28 = sld [smem:[#allocation3 + %s332_s18]]  ;;  %s335_s10 = sadd.s32 3, %s4225_s17  ;;  %v428_v3 = vld [vmem:[#allocation4 + $0x178] sm:$0xff]  ;;  %3115 = vmatpush3.msra.mxu0 %v396_v2  ;;  %v427_v7 = vld [vmem:[#allocation4 + $0x170] sm:$0xff]  ;;  %v394_v10 = vld [vmem:[#allocation4 + $0x68] sm:$0xff]  ;;  %vm356_vm3 = vcmask 1043456  }
  0x82   : > { %3150 = vmatpush3.msra.mxu1 %v428_v3  ;;  %3116 = vmatprep.subr.mxu0 %v411_v4  ;;  %v426_v11 = vld [vmem:[#allocation4 + $0x168] sm:$0xff]  ;;  %s4237_s22 = sld [smem:[#allocation3 + %s335_s10]]  ;;  %s338_s21 = sadd.s32 4, %s4225_s17  ;;  %v409_v12 = vld [vmem:[#allocation4 + $0xe0] sm:$0xff]  ;;  %v408_v18 = vld [vmem:[#allocation4 + $0xd8] sm:$0xff]  ;;  %vm358_vm4 = vcmask 1044480  }
  0x83   : > { %3151 = vmatprep.subr.mxu1 %v443_v5  ;;  %3117 = vmatpush3.msra.mxu0 %v395_v6  ;;  %v441_v13 = vld [vmem:[#allocation4 + $0x1e0] sm:$0xff]  ;;  %v440_v19 = vld [vmem:[#allocation4 + $0x1d8] sm:$0xff]  ;;  %s4242_s13 = sld [smem:[#allocation3 + %s338_s21]]  ;;  %s341_s19 = sadd.s32 5, %s4225_s17  ;;  %v407_v22 = vld [vmem:[#allocation4 + $0xd0] sm:$0xff]  ;;  %vm360_vm5 = vcmask 1045504  }
  0x84   : > { %3152 = vmatpush3.msra.mxu1 %v427_v7  ;;  %3118 = vmatprep.subr.mxu0 %v410_v8  ;;  %v393_v14 = vld [vmem:[#allocation4 + $0x60] sm:$0xff]  ;;  %v392_v20 = vld [vmem:[#allocation4 + $0x58] sm:$0xff]  ;;  %v439_v23 = vld [vmem:[#allocation4 + $0x1d0] sm:$0xff]  ;;  %s4247_s25 = sld [smem:[#allocation3 + %s341_s19]]  ;;  %s344_s12 = sadd.s32 6, %s4225_s17  ;;  %v365_v1 = vand.u32 127, %v364_v51 }
  0x85   : > { %3153 = vmatprep.subr.mxu1 %v442_v9  ;;  %v425_v15 = vld [vmem:[#allocation4 + $0x160] sm:$0xff]  ;;  %v328_v16 = vstv %s4229_s23  ;;  %3119 = vmatpush3.msra.mxu0 %v394_v10  ;;  %v424_v21 = vld [vmem:[#allocation4 + $0x158] sm:$0xff]  ;;  %v391_v26 = vld [vmem:[#allocation4 + $0x50] sm:$0xff]  ;;  %s4252_s26 = sld [smem:[#allocation3 + %s344_s12]]  ;;  %s347_s27 = sadd.s32 7, %s4225_s17  ;;  %vm362_vm6 = vcmask 1046528  }
  0x86   : > { %v331_v17 = vstv %s4231_s24  ;;  %3154 = vmatpush3.msra.mxu1 %v426_v11  ;;  %3120 = vmatprep.subr.mxu0 %v409_v12  ;;  %v423_v27 = vld [vmem:[#allocation4 + $0x150] sm:$0xff]  ;;  %v406_v28 = vld [vmem:[#allocation4 + $0xc8] sm:$0xff]  ;;  %v405_v34 = vld [vmem:[#allocation4 + $0xc0] sm:$0xff]  ;;  %s4257_s20 = sld [smem:[#allocation3 + %s347_s27]]  ;;  %v366_v12 = vadd.s32 128, %v365_v1  ;;  %vm4044_vm11 = vmmov 0  }
  0x87   : > { %3155 = vmatprep.subr.mxu1 %v441_v13  ;;  %3121 = vmatpush3.msra.mxu0 %v393_v14  ;;  %v334_v24 = vstv %s4234_s28  ;;  %v351_v25 = vsel %vm350_vm0, %v328_v16, %v331_v17  ;;  %v438_v29 = vld [vmem:[#allocation4 + $0x1c8] sm:$0xff]  ;;  %v437_v35 = vld [vmem:[#allocation4 + $0x1c0] sm:$0xff]  ;;  %v404_v38 = vld [vmem:[#allocation4 + $0xb8] sm:$0xff]  ;;  %v368_v16 = vadd.s32 384, %v365_v1  ;;  %s4045_s17 = smov 64   ;;  %vm882_vm12 = vcmask 523264  }
  0x88   : > { %3156 = vmatpush3.msra.mxu1 %v425_v15  ;;  %3122 = vmatprep.subr.mxu0 %v408_v18  ;;  %v390_v30 = vld [vmem:[#allocation4 + $0x48] sm:$0xff]  ;;  %v337_v32 = vstv %s4237_s22  ;;  %v353_v33 = vsel %vm352_vm1, %v351_v25, %v334_v24  ;;  %v389_v36 = vld [vmem:[#allocation4 + $0x40] sm:$0xff]  ;;  %v436_v39 = vld [vmem:[#allocation4 + $0x1b8] sm:$0xff]  ;;  %v367_v18 = vadd.s32 256, %v365_v1  ;;  %vm604_vm13 = vcmask 64512   ;;  %s322_s23 = sand.u32 1, %s4014_s29  }
  0x89   : > { %3157 = vmatprep.subr.mxu1 %v440_v19  ;;  %3123 = vmatpush3.msra.mxu0 %v392_v20  ;;  %v422_v31 = vld [vmem:[#allocation4 + $0x148] sm:$0xff]  ;;  %v421_v37 = vld [vmem:[#allocation4 + $0x140] sm:$0xff]  ;;  %v340_v40 = vstv %s4242_s13  ;;  %v355_v41 = vsel %vm354_vm2, %v353_v33, %v337_v32  ;;  %v388_v42 = vld [vmem:[#allocation4 + $0x38] sm:$0xff]  ;;  %v4041_v20 = vmov 1.0   ;;  %vm930_vm14 = vcmask 130048   ;;  %s2926_s24 = sshll.u32 %s322_s23, 5 }
  0x8a   : > { %3158 = vmatpush3.msra.mxu1 %v424_v21  ;;  %3124 = vmatprep.subr.mxu0 %v407_v22  ;;  %v420_v43 = vld [vmem:[#allocation4 + $0x138] sm:$0xff]  ;;  %v403_v44 = vld [vmem:[#allocation4 + $0xb0] sm:$0xff]  ;;  %v402_v48 = vld [vmem:[#allocation4 + $0xa8] sm:$0xff]  ;;  %v343_v49 = vstv %s4247_s25  ;;  %v357_v50 = vsel %vm356_vm3, %v355_v41, %v340_v40  ;;  %s3113_s18 = sshll.u32 %s4112_s9, 9  ;;  %s324_s28 = scalar_lea.vmem [#allocation15], %s2926_s24 }
  0x8b   : > { %3159 = vmatprep.subr.mxu1 %v439_v23  ;;  %3125 = vmatpush3.msra.mxu0 %v391_v26  ;;  %v435_v45 = vld [vmem:[#allocation4 + $0x1b0] sm:$0xff]  ;;  %v434_v52 = vld [vmem:[#allocation4 + $0x1a8] sm:$0xff]  ;;  %v401_v55 = vld [vmem:[#allocation4 + $0xa0] sm:$0xff]  ;;  %v346_v61 = vstv %s4252_s26  ;;  %v359_v62 = vsel %vm358_vm4, %v357_v50, %v343_v49  ;;  %s2803_s10 = sshll.u32 %s324_s28, 4  ;;  %s4417_s13 = scalar_lea.hbm %s4465_s7, %s3113_s18  ;;  %s4419_s10 = int_to_ptr.vmem [resolvable:$true] %s2803_s10 }
  0x8c   : > { %3160 = vmatpush3.msra.mxu1 %v423_v27  ;;  %3126 = vmatprep.subr.mxu0 %v406_v28  ;;  %v387_v46 = vld [vmem:[#allocation4 + $0x30] sm:$0xff]  ;;  %v386_v53 = vld [vmem:[#allocation4 + $0x28] sm:$0xff]  ;;  %v433_v56 = vld [vmem:[#allocation4 + $0x1a0] sm:$0xff]  ;;  %v349_v6 = vstv %s4257_s20  ;;  %v361_v7 = vsel %vm360_vm5, %v359_v62, %v346_v61  ;;  %s2789_s9 = scalar_lea.sflag [#allocation6], %s322_s23  ;;  %s3944_s19 = scalar_lea.vmem %s4419_s10, 512 }
  0x8d   : > { %3161 = vmatprep.subr.mxu1 %v438_v29  ;;  %3127 = vmatpush3.msra.mxu0 %v390_v30  ;;  %v419_v47 = vld [vmem:[#allocation4 + $0x130] sm:$0xff]  ;;  %v418_v54 = vld [vmem:[#allocation4 + $0x128] sm:$0xff]  ;;  %v385_v57 = vld [vmem:[#allocation4 + $0x20] sm:$0xff]  ;;  %v363_v15 = vsel %vm362_vm6, %v361_v7, %v349_v6  ;;  %p3945_p0 = scmp.ne.s32.totalorder %s4419_s10, %s3944_s19  ;;  %s4047_s25 = smov [#allocation15]  }
  0x8e   : > { %3162 = vmatpush3.msra.mxu1 %v422_v31  ;;  %3128 = vmatprep.subr.mxu0 %v405_v34  ;;  %v417_v58 = vld [vmem:[#allocation4 + $0x120] sm:$0xff]  ;;  %v400_v59 = vld [vmem:[#allocation4 + $0x98] sm:$0xff]  ;;  %v399_v2 = vld [vmem:[#allocation4 + $0x90] sm:$0xff]  ;;  %vm370_vm7 = vcmp.eq.s32.totalorder %v363_v15, %v366_v12  ;;  %vm372_vm8 = vcmp.eq.s32.totalorder %v363_v15, %v368_v16  ;;  %vm369_vm9 = vcmp.eq.s32.totalorder %v363_v15, %v365_v1  ;;  %v4042_v34 = vmov 0.0   ;;  %s3948_s12 = sshll.u32 %s4047_s25, 4  ;;  %s3949_s12 = int_to_ptr.vmem [resolvable:$false] %s3948_s12 }
  0x8f   : > { %3163 = vmatprep.subr.mxu1 %v437_v35  ;;  %3129 = vmatpush3.msra.mxu0 %v389_v36  ;;  %v432_v60 = vld [vmem:[#allocation4 + $0x198] sm:$0xff]  ;;  %v431_v3 = vld [vmem:[#allocation4 + $0x190] sm:$0xff]  ;;  %v398_v8 = vld [vmem:[#allocation4 + $0x88] sm:$0xff]  ;;  %vm371_vm10 = vcmp.eq.s32.totalorder %v363_v15, %v367_v18  ;;  %p3946_p12 = pnand %p3945_p0, %p4129_p10  ;;  %s3950_s26 = scalar_lea.vmem %s3949_s12, 1024 }
  0x90   : > { %3164 = vmatpush3.msra.mxu1 %v421_v37  ;;  %3130 = vmatprep.subr.mxu0 %v404_v38  ;;  %v384_v63 = vld [vmem:[#allocation4 + $0x18] sm:$0xff]  ;;  %v383_v4 = vld [vmem:[#allocation4 + $0x10] sm:$0xff]  ;;  %v430_v9 = vld [vmem:[#allocation4 + $0x188] sm:$0xff]  ;;  %p3951_p5 = scmp.lt.s32.totalorder %s4419_s10, %s3949_s12  ;;  %p3952_p2 = scmp.lt.s32.totalorder %s3950_s26, %s3944_s19 }
  0x91   : > { %3165 = vmatprep.subr.mxu1 %v436_v39  ;;  %3131 = vmatpush3.msra.mxu0 %v388_v42  ;;  %v416_v0 = vld [vmem:[#allocation4 + $0x118] sm:$0xff]  ;;  %v415_v5 = vld [vmem:[#allocation4 + $0x110] sm:$0xff]  ;;  %v382_v10 = vld [vmem:[#allocation4 + $0x8] sm:$0xff]  ;;  %p3947_p13 = pneg %p3946_p12 }
  0x92   : > { %3166 = vmatpush3.msra.mxu1 %v420_v43  ;;  %3132 = vmatprep.subr.mxu0 %v403_v44  ;;  %v414_v11 = vld [vmem:[#allocation4 + $0x108] sm:$0xff]  ;;  %v397_v13 = vld [vmem:[#allocation4 + $0x80] sm:$0xff]  ;;  %v3529_v38 = vld [vmem:[#allocation10 + $0x128] ss:$24 sps:$4 sm:$0xff]   ;;  %p3953_p4 = por %p3952_p2, %p3951_p5 }
  0x93   : > { %3167 = vmatprep.subr.mxu1 %v435_v45  ;;  %3133 = vmatpush3.msra.mxu0 %v387_v46  ;;  %v429_v14 = vld [vmem:[#allocation4 + $0x180] sm:$0xff]  ;;  %v3528_v36 = vld [vmem:[#allocation10 + $0x124] ss:$24 sps:$4 sm:$0xff]   ;;  %v3526_v37 = vld [vmem:[#allocation10 + $0x120] ss:$24 sps:$4 sm:$0xff]  }
  0x94   : > { %3168 = vmatpush3.msra.mxu1 %v419_v47  ;;  %3134 = vmatprep.subr.mxu0 %v402_v48  ;;  %v381_v17 = vld [vmem:[#allocation4] sm:$0xff]  ;;  %v3534_v46 = vld [vmem:[#allocation10 + $0xc0] ss:$24 sps:$4 sm:$0xff]   ;;  %v3536_v47 = vld [vmem:[#allocation10 + $0xc4] ss:$24 sps:$4 sm:$0xff]   ;;  %p3954_p6 = pnand %p3953_p4, %p3947_p13 }
  0x95   : > { %3169 = vmatprep.subr.mxu1 %v434_v52  ;;  %3135 = vmatpush3.msra.mxu0 %v386_v53  ;;  %v413_v19 = vld [vmem:[#allocation4 + $0x100] sm:$0xff]  ;;  %v3537_v48 = vld [vmem:[#allocation10 + $0xc8] ss:$24 sps:$4 sm:$0xff]   ;;  %v3544_v53 = vld [vmem:[#allocation10 + $0x64] ss:$24 sps:$4 sm:$0xff]  }
  0x96   : > { %3170 = vmatpush3.msra.mxu1 %v418_v54  ;;  %3136 = vmatprep.subr.mxu0 %v401_v55  ;;  %v445_v23 = vld [vmem:[#allocation7] sm:$0xff]  ;;  %v4043_v54 = vmov 0   ;;  %v3542_v55 = vld [vmem:[#allocation10 + $0x60] ss:$24 sps:$4 sm:$0xff]  }
  0x97   : > { %3171 = vmatprep.subr.mxu1 %v433_v56  ;;  %3137 = vmatpush3.msra.mxu0 %v385_v57  ;;  %v586_v29 = vld [vmem:[#allocation7 + $0x40] ss:$0 sm:$0xff]  ;;  %v3524_v33 = vld [vmem:[#allocation10 + $0x154] ss:$24 sps:$4 sm:$0xff]   ;;  %v3545_v56 = vld [vmem:[#allocation10 + $0x68] ss:$24 sps:$4 sm:$0xff]  }
  0x98   : > { %3172 = vmatpush3.msra.mxu1 %v417_v58  ;;  %3138 = vmatprep.subr.mxu0 %v400_v59  ;;  %v3522_v32 = vld [vmem:[#allocation10 + $0x150] ss:$24 sps:$4 sm:$0xff]   ;;  %v3532_v43 = vld [vmem:[#allocation10 + $0xf4] ss:$24 sps:$4 sm:$0xff]   ;;  %v3550_v61 = vld [vmem:[#allocation10] ss:$24 sps:$4 sm:$0xff]  }
  0x99   : > { %3173 = vmatprep.subr.mxu1 %v432_v60  ;;  %3139 = vmatpush3.msra.mxu0 %v384_v63  ;;  %v3525_v35 = vld [vmem:[#allocation10 + $0x158] ss:$24 sps:$4 sm:$0xff]   ;;  %v3540_v49 = vld [vmem:[#allocation10 + $0x94] ss:$24 sps:$4 sm:$0xff]   ;;  %v3552_v60 = vld [vmem:[#allocation10 + $0x4] ss:$24 sps:$4 sm:$0xff]  }
  0x9a   : > { %3174 = vmatpush3.msra.mxu1 %v416_v0  ;;  %3140 = vmatprep.subr.mxu0 %v399_v2  ;;  %v3530_v44 = vld [vmem:[#allocation10 + $0xf0] ss:$24 sps:$4 sm:$0xff]   ;;  %v3548_v57 = vld [vmem:[#allocation10 + $0x34] ss:$24 sps:$4 sm:$0xff]  }
  0x9b   : > { %3175 = vmatprep.subr.mxu1 %v431_v3  ;;  %3141 = vmatpush3.msra.mxu0 %v383_v4  ;;  %v3533_v45 = vld [vmem:[#allocation10 + $0xf8] ss:$24 sps:$4 sm:$0xff]   ;;  %v3553_v62 = vld [vmem:[#allocation10 + $0x8] ss:$24 sps:$4 sm:$0xff]  }
  0x9c   : > { %3176 = vmatpush3.msra.mxu1 %v415_v5  ;;  %3142 = vmatprep.subr.mxu0 %v398_v8  ;;  %v3538_v50 = vld [vmem:[#allocation10 + $0x90] ss:$24 sps:$4 sm:$0xff]  }
  0x9d   : > { %3177 = vmatprep.subr.mxu1 %v430_v9  ;;  %3143 = vmatpush3.msra.mxu0 %v382_v10  ;;  %v3541_v52 = vld [vmem:[#allocation10 + $0x98] ss:$24 sps:$4 sm:$0xff]   ;;  %v4287_v9 = vshrl.u32 %v364_v51, 7 }
  0x9e   : > { %3178 = vmatpush3.msra.mxu1 %v414_v11  ;;  %3144 = vmatprep.subr.mxu0 %v397_v13  ;;  %v3546_v58 = vld [vmem:[#allocation10 + $0x30] ss:$24 sps:$4 sm:$0xff]  }
  0x9f   : > { %3179 = vmatprep.subr.mxu1 %v429_v14  ;;  %3145 = vmatpush3.msra.mxu0 %v381_v17  ;;  %v3549_v59 = vld [vmem:[#allocation10 + $0x38] ss:$24 sps:$4 sm:$0xff]   ;;  %v4290_v10 = vsub.s32 0, %v4287_v9  ;;  %v4293_v11 = vsub.s32 1, %v4287_v9 }
  0xa0   : > { %2932 = vmatprep.mubr.msk.f32.mxu0 %vm370_vm7, %v4041_v20  ;;  %3180 = vmatpush3.msra.mxu1 %v413_v19  ;;  %v588_v3 = vld [vmem:[#allocation7 + $0x41] ss:$0 sm:$0xff]  ;;  %v589_v5 = vld [vmem:[#allocation7 + $0x42] ss:$0 sm:$0xff] }
  0xa1   : > { %2934 = vmatprep.mubr.msk.f32.mxu1 %vm372_vm8, %v4041_v20  ;;  %2933 = vmatmul.mubr.msk.f32.vlgmr.msra.gmra.mxu0 %vm369_vm9, %v4041_v20  ;;  %v639_v12 = vld [vmem:[#allocation9] ss:$8 sm:$0x7] }
  0xa2   : > { %2935 = vmatmul.mubr.msk.f32.vlgmr.msra.gmra.mxu1 %vm371_vm10, %v4041_v20  ;;  %3281 = vmatprep.subr.bf16.mxu1 %v4042_v34  ;;  %v645_v13 = vrot.slane %v639_v12, %v4290_v10  ;;  %v649_v14 = vrot.slane %v639_v12, %v4293_v11 }
  0xa3   : > { %785 = vmatprep.subr.bf16.mxu0 %v3524_v33  ;;  %3282 = vmatpush3.bf16.msra.mxu1 %v3525_v35 }
  0xa4   : > { %786 = vmatpush1.bf16.msra.mxu0 %v3522_v32  ;;  %3283 = vmatprep.subr.bf16.mxu1 %v4042_v34 }
  0xa5   : > { %787 = vmatprep.subr.bf16.mxu0 %v3528_v36  ;;  %817 = vmatprep.mubr.bf16.mxu0 %v4043_v54  ;;  %v4308_v36 = vsel %vm604_vm13, -1e+30, %v4042_v34 }
  0xa6   : > { %3297 = vmatprep.mubr.msk.bf16.mxu1 %vm4044_vm11, %v4042_v34 }
  0xa7   : > { %3284 = vmatpush3.bf16.msra.mxu1 %v3529_v38 }
  0xa8   : > { %788 = vmatpush1.bf16.msra.mxu0 %v3526_v37  ;;  %3285 = vmatprep.subr.bf16.mxu1 %v4042_v34 }
  0xa9   : > { %789 = vmatprep.subr.bf16.mxu0 %v3532_v43 }
  0xab   : > { %3286 = vmatpush3.bf16.msra.mxu1 %v3533_v45 }
  0xac   : > { %790 = vmatpush1.bf16.msra.mxu0 %v3530_v44  ;;  %3287 = vmatprep.subr.bf16.mxu1 %v4042_v34 }
  0xad   : > { %791 = vmatprep.subr.bf16.mxu0 %v3536_v47 }
  0xaf   : > { %3288 = vmatpush3.bf16.msra.mxu1 %v3537_v48 }
  0xb0   : > { %792 = vmatpush1.bf16.msra.mxu0 %v3534_v46  ;;  %3289 = vmatprep.subr.bf16.mxu1 %v4042_v34 }
  0xb1   : > { %793 = vmatprep.subr.bf16.mxu0 %v3540_v49 }
  0xb3   : > { %3290 = vmatpush3.bf16.msra.mxu1 %v3541_v52 }
  0xb4   : > { %794 = vmatpush1.bf16.msra.mxu0 %v3538_v50  ;;  %3291 = vmatprep.subr.bf16.mxu1 %v4042_v34 }
  0xb5   : > { %795 = vmatprep.subr.bf16.mxu0 %v3544_v53  ;;  %v4316_v53 = vsub.s32 2, %v4287_v9 }
  0xb7   : > { %3292 = vmatpush3.bf16.msra.mxu1 %v3545_v56 }
  0xb8   : > { %796 = vmatpush1.bf16.msra.mxu0 %v3542_v55  ;;  %3293 = vmatprep.subr.bf16.mxu1 %v4042_v34  ;;  %v653_v55 = vrot.slane %v639_v12, %v4316_v53  ;;  %v3560_v12 = vld [vmem:[#allocation10 + $0x3c] ss:$24 sps:$4 sm:$0xff]  }
  0xb9   : > { %797 = vmatprep.subr.bf16.mxu0 %v3548_v57 }
  0xbb   : > { %3294 = vmatpush3.bf16.msra.mxu1 %v3549_v59 }
  0xbc   : > { %798 = vmatpush1.bf16.msra.mxu0 %v3546_v58  ;;  %3295 = vmatprep.subr.bf16.mxu1 %v4042_v34 }
  0xbd   : > { %799 = vmatprep.subr.bf16.mxu0 %v3552_v60 }
  0xbf   : > { %3296 = vmatpush3.bf16.msra.mxu1 %v3553_v62 }
  0xc0   : > { %800 = vmatpush1.bf16.msra.mxu0 %v3550_v61  ;;  %3301 = vmatprep.subr.bf16.mxu1 %v4042_v34 }
  0xc1   : > { %3313 = vmatprep.subr.bf16.mxu0 %v4042_v34 }
 0x161   : > { %v3146_v21 = vpop.f32.mrf.mxu0 }
 0x162   : > { %v3181_v22 = vpop.f32.mrf.mxu1 }
 0x163   : > { %v3147_v24 = vpop.f32.mrf.mxu0 }
 0x164   : > { %v3182_v25 = vpop.f32.mrf.mxu1  ;;  %v3148_v26 = vadd.f32 %v3147_v24, %v3146_v21 }
 0x165   : > { %v3183_v28 = vadd.f32 %v3182_v25, %v3181_v22 }
 0x166   : > { %v513_v27 = vadd.f32 %v3148_v26, %v445_v23 }
 0x168   : > { %v583_v30 = vadd.f32 %v3183_v28, %v513_v27 }
 0x16a   : > { %v587_v31 = vadd.f32 %v586_v29, %v583_v30  ;;  %v4046_v30 = vmov -1e+30  }
 0x16c   : > { %590 = vadd.xlane.f32.xlu0 %v587_v31 }
 0x1f5   : > { %v591_v39 = vpop.xlane.xlu0 %590 }
 0x1f6   : > { %v593_v40 = vmul.f32 0.0078125, %v591_v39 }
 0x1f8   : > { %v594_v41 = vsub.f32 %v587_v31, %v593_v40  ;;  %v4304_v31 = vsel %vm604_vm13, 0.0, %v4046_v30  ;;  %v3565_v30 = vld [vmem:[#allocation10 + $0x130] ss:$24 sps:$4 sm:$0xff]  }
 0x1fa   : > { %v595_v42 = vmul.f32 %v594_v41, %v594_v41 }
 0x1fc   : > { %596 = vadd.xlane.f32.xlu0 %v595_v42 }
 0x285   : > { %v597_v63 = vpop.xlane.xlu0 %596 }
 0x286   : > { %v598_v0 = vmul.f32 0.0078125, %v597_v63 }
 0x288   : > { %v599_v1 = vadd.f32 1e-12, %v598_v0 }
 0x28a   : > { %3738 = vrsqrt.f32 %v599_v1 }
 0x297   : > { %v3739_v2 = vpop.eup %3738 }
 0x298   : > { %v601_v4 = vmul.f32 %v3739_v2, %v594_v41  ;;  %v3554_v2 = vld [vmem:[#allocation10 + $0x15c] ss:$24 sps:$4 sm:$0xff]  }
 0x29a   : > { %v602_v6 = vmul.f32 %v601_v4, %v588_v3  ;;  %v3555_v3 = vld [vmem:[#allocation10 + $0x12c] ss:$24 sps:$4 sm:$0xff]   ;;  %v3556_v4 = vld [vmem:[#allocation10 + $0xfc] ss:$24 sps:$4 sm:$0xff]  }
 0x29c   : > { %v4278_v7 = vadd.f32 %v602_v6, %v589_v5  ;;  %v3557_v5 = vld [vmem:[#allocation10 + $0xcc] ss:$24 sps:$4 sm:$0xff]   ;;  %v3558_v6 = vld [vmem:[#allocation10 + $0x9c] ss:$24 sps:$4 sm:$0xff]  }
 0x29e   : > { %v640_v8 = vpack.c.bf16 %v4278_v7, %v4278_v7 }
 0x2a0   : > { %818 = vmatmul.mubr.bf16.vlgmr.msra.gmra.mxu0 %v640_v8  ;;  %3298 = vmatmul.mubr.bf16.vlgmr.msra.gmra.mxu1 %v640_v8  ;;  %v3559_v8 = vld [vmem:[#allocation10 + $0x6c] ss:$24 sps:$4 sm:$0xff]  }
 0x2a1   : > { %3303 = vmatprep.mubr.msk.bf16.mxu1 %vm4044_vm11, %v4042_v34  ;;  %3329 = vmatprep.mubr.msk.bf16.mxu0 %vm4044_vm11, %v4042_v34 }
 0x2a2   : > { %3314 = vmatpush3.bf16.msra.mxu0 %v3554_v2  ;;  %v3590_v2 = vld [vmem:[#allocation12 + $0x68] sm:$0xff]  }
 0x2a3   : > { %3315 = vmatprep.subr.bf16.mxu0 %v4042_v34 }
 0x2a6   : > { %3316 = vmatpush3.bf16.msra.mxu0 %v3555_v3  ;;  %v3591_v3 = vld [vmem:[#allocation12 + $0x28] sm:$0xff]  }
 0x2a7   : > { %3317 = vmatprep.subr.bf16.mxu0 %v4042_v34 }
 0x2aa   : > { %3318 = vmatpush3.bf16.msra.mxu0 %v3556_v4  ;;  %v3592_v4 = vld [vmem:[#allocation12 + $0x60] sm:$0xff]  }
 0x2ab   : > { %3319 = vmatprep.subr.bf16.mxu0 %v4042_v34 }
 0x2ae   : > { %3320 = vmatpush3.bf16.msra.mxu0 %v3557_v5  ;;  %v3593_v5 = vld [vmem:[#allocation12 + $0x20] sm:$0xff]  }
 0x2af   : > { %3321 = vmatprep.subr.bf16.mxu0 %v4042_v34 }
 0x2b2   : > { %3322 = vmatpush3.bf16.msra.mxu0 %v3558_v6  ;;  %v3594_v6 = vld [vmem:[#allocation12 + $0x58] sm:$0xff]  }
 0x2b3   : > { %3323 = vmatprep.subr.bf16.mxu0 %v4042_v34 }
 0x2b6   : > { %3324 = vmatpush3.bf16.msra.mxu0 %v3559_v8  ;;  %v3595_v8 = vld [vmem:[#allocation12 + $0x18] sm:$0xff]  }
 0x2b7   : > { %3325 = vmatprep.subr.bf16.mxu0 %v4042_v34 }
 0x2ba   : > { %3326 = vmatpush3.bf16.msra.mxu0 %v3560_v12  ;;  %v3596_v12 = vld [vmem:[#allocation12 + $0x50] sm:$0xff]  }
 0x2bb   : > { %3327 = vmatprep.subr.bf16.mxu0 %v4042_v34 }
 0x360   : > { %v819_v15 = vpop.f32.mrf.mxu0  ;;  %v860_v16 = vpop.f32.mrf.mxu1 }
 0x361   : > { %v820_v19 = vadd.f32 %v819_v15, %v645_v13  ;;  %v861_v56 = vadd.f32 %v860_v16, %v653_v55  ;;  %v3561_v13 = vld [vmem:[#allocation10 + $0xc] ss:$24 sps:$4 sm:$0xff]  }
 0x362   : > { %v821_v17 = vpop.f32.mrf.mxu0  ;;  %v3299_v18 = vpop.f32.mrf.mxu1  ;;  %3328 = vmatpush3.bf16.msra.mxu0 %v3561_v13  ;;  %v3597_v13 = vld [vmem:[#allocation12 + $0x10] sm:$0xff]  }
 0x363   : > { %v822_v20 = vadd.f32 %v821_v17, %v649_v14  ;;  %v866_v24 = vmul.f32 0.125, %v820_v19 }
 0x364   : > { %v823_v21 = vpop.f32.mrf.mxu0  ;;  %v863_v51 = vpop.f32.mrf.mxu1 }
 0x365   : > { %873 = vrot.lane.b32.xlu1 %v822_v20, %s4045_s17  ;;  %v1019_v21 = vld [vmem:[#allocation9 + $0x1] ss:$0 sm:$0xff] }
 0x366   : > { %v824_v22 = vpop.f32.mrf.mxu0  ;;  %v3300_v23 = vpop.f32.mrf.mxu1 }
 0x369   : > { %868 = vrot.lane.b32.xlu1 %v866_v24, %s4045_s17 }
 0x3d7   : > { %v874_v25 = vpop.permute.xlu1 %873 }
 0x3d8   : > { %v876_v26 = vpack.c.bf16 %v874_v25, %v822_v20 }
 0x3da   : > { %v887_v27 = vsel %vm882_vm12, %v876_v26, 0 }
 0x3db   : > { %3302 = vmatpush3.bf16.xpose.msra.mxu1 %v887_v27  ;;  %v869_v28 = vpop.permute.xlu1 %868  ;;  %v3562_v27 = vld [vmem:[#allocation10 + $0x160] ss:$24 sps:$4 sm:$0xff]  }
 0x3dc   : > { %3307 = vmatprep.subr.bf16.mxu1 %v4042_v34  ;;  %v871_v29 = vpack.c.bf16 %v869_v28, %v866_v24  ;;  %v3564_v28 = vld [vmem:[#allocation10 + $0x164] ss:$24 sps:$4 sm:$0xff]  }
 0x3e2   : > { %3304 = vmatmul.mubr.msk.bf16.vlgmr.msra.gmra.mxu1 %vm882_vm12, %v871_v29  ;;  %v3567_v29 = vld [vmem:[#allocation10 + $0x134] ss:$24 sps:$4 sm:$0xff]  }
 0x3e3   : > { %3309 = vmatprep.mubr.msk.bf16.mxu1 %vm4044_vm11, %v4042_v34 }
 0x4a2   : > { %v923_v32 = vpop.f32.mrf.mxu1 }
 0x4a3   : > { %v924_v33 = vadd.f32 %v923_v32, %v4304_v31 }
 0x4a4   : > { %v3305_v35 = vpop.f32.mrf.mxu1 }
 0x4a5   : > { %v931_v37 = vsel %vm930_vm14, %v924_v33, -inf }
 0x4a6   : > { %932 = vmax.xlane.f32.xlu0 %v931_v37  ;;  %v926_v38 = vpop.f32.mrf.mxu1 }
 0x4a7   : > { %v927_v39 = vadd.f32 %v926_v38, %v4308_v36  ;;  %v3570_v38 = vld [vmem:[#allocation10 + $0x104] ss:$24 sps:$4 sm:$0xff]  }
 0x4a8   : > { %v3306_v40 = vpop.f32.mrf.mxu1 }
 0x4a9   : > { %v934_v41 = vsel %vm930_vm14, %v927_v39, -inf  ;;  %v3573_v40 = vld [vmem:[#allocation10 + $0xd4] ss:$24 sps:$4 sm:$0xff]  }
 0x4aa   : > { %935 = vmax.xlane.f32.xlu1 %v934_v41  ;;  %v3576_v41 = vld [vmem:[#allocation10 + $0xa4] ss:$24 sps:$4 sm:$0xff]  }
 0x52f   : > { %v933_v42 = vpop.xlane.xlu0 %932 }
 0x530   : > { %v937_v43 = vsub.f32 %v924_v33, %v933_v42  ;;  %v3574_v42 = vld [vmem:[#allocation10 + $0xa0] ss:$24 sps:$4 sm:$0xff]  }
 0x532   : > { %v939_v44 = vmul.f32 1.442695, %v937_v43  ;;  %v3579_v43 = vld [vmem:[#allocation10 + $0x74] ss:$24 sps:$4 sm:$0xff]  }
 0x533   : > { %v936_v45 = vpop.xlane.xlu1 %935 }
 0x534   : > { %3740 = vpow2.f32 %v939_v44  ;;  %v938_v46 = vsub.f32 %v927_v39, %v936_v45  ;;  %v3568_v39 = vld [vmem:[#allocation10 + $0x100] ss:$24 sps:$4 sm:$0xff]   ;;  %v3577_v44 = vld [vmem:[#allocation10 + $0x70] ss:$24 sps:$4 sm:$0xff]   ;;  %v3582_v45 = vld [vmem:[#allocation10 + $0x44] ss:$24 sps:$4 sm:$0xff]  }
 0x536   : > { %v941_v47 = vmul.f32 1.442695, %v938_v46  ;;  %v3580_v46 = vld [vmem:[#allocation10 + $0x40] ss:$24 sps:$4 sm:$0xff]  }
 0x538   : > { %3742 = vpow2.f32 %v941_v47  ;;  %v3585_v47 = vld [vmem:[#allocation10 + $0x14] ss:$24 sps:$4 sm:$0xff]  }
 0x541   : > { %v3741_v48 = vpop.eup %3740 }
 0x542   : > { %v943_v49 = vsel %vm930_vm14, %v3741_v48, 0.0 }
 0x543   : > { %944 = vadd.xlane.f32.xlu0 %v943_v49 }
 0x545   : > { %v3743_v50 = vpop.eup %3742 }
 0x546   : > { %v946_v52 = vsel %vm930_vm14, %v3743_v50, 0.0 }
 0x547   : > { %947 = vadd.xlane.f32.xlu0 %v946_v52 }
 0x55d   : > { %878 = vrot.lane.b32.xlu0 %v861_v56, %s4045_s17 }
 0x5cc   : > { %v945_v57 = vpop.xlane.xlu0 %944 }
 0x5cd   : > { %3744 = vrcp.f32 %v945_v57 }
 0x5d0   : > { %v948_v58 = vpop.xlane.xlu0 %947 }
 0x5d1   : > { %3746 = vrcp.f32 %v948_v58  ;;  %v1111_v58 = vld [vmem:[#allocation9 + $0x3] ss:$0 sm:$0xff] }
 0x5d4   : > { %v879_v59 = vpop.permute.xlu0 %878 }
 0x5d5   : > { %v881_v60 = vpack.c.bf16 %v879_v59, %v861_v56  ;;  %v1110_v56 = vld [vmem:[#allocation9 + $0x2] ss:$0 sm:$0xff] }
 0x5d7   : > { %3308 = vmatpush3.bf16.msra.mxu1 %v881_v60 }
 0x5d8   : > { %1235 = vmatprep.subr.bf16.mxu1 %v3564_v28 }
 0x5da   : > { %v3745_v61 = vpop.eup %3744 }
 0x5db   : > { %v951_v63 = vmul.f32 %v3745_v61, %v3741_v48  ;;  %v3583_v48 = vld [vmem:[#allocation10 + $0x10] ss:$24 sps:$4 sm:$0xff]  }
 0x5de   : > { %v3747_v62 = vpop.eup %3746 }
 0x5df   : > { %v952_v0 = vmul.f32 %v3747_v62, %v3743_v50  ;;  %v3586_v62 = vld [vmem:[#allocation12 + $0x78] sm:$0xff]  }
 0x5e0   : > { %3206 = vmatprep.subr.bf16.mxu0 %v3586_v62  ;;  %v3605_v62 = vld [vmem:[#allocation10 + $0x2d8] ss:$24 sps:$4 sm:$0xff]  }
 0x5e1   : > { %v953_v1 = vpack.c.bf16 %v952_v0, %v951_v63  ;;  %v3587_v63 = vld [vmem:[#allocation12 + $0x38] sm:$0xff]   ;;  %v3588_v0 = vld [vmem:[#allocation12 + $0x70] sm:$0xff]  }
 0x5e3   : > { %3310 = vmatmul.mubr.msk.bf16.vlgmr.msra.gmra.mxu1 %vm930_vm14, %v953_v1  ;;  %v3589_v1 = vld [vmem:[#allocation12 + $0x30] sm:$0xff]  }
 0x5e4   : > { %1267 = vmatprep.mubr.bf16.mxu1 %v4043_v54  ;;  %1236 = vmatpush1.bf16.msra.mxu1 %v3562_v27 }
 0x5e5   : > { %1237 = vmatprep.subr.bf16.mxu1 %v3567_v29 }
 0x5e8   : > { %1238 = vmatpush1.bf16.msra.mxu1 %v3565_v30 }
 0x5e9   : > { %1239 = vmatprep.subr.bf16.mxu1 %v3570_v38 }
 0x5ec   : > { %1240 = vmatpush1.bf16.msra.mxu1 %v3568_v39 }
 0x5ed   : > { %1241 = vmatprep.subr.bf16.mxu1 %v3573_v40 }
 0x6a3   : > { %v991_v14 = vpop.f32.mrf.mxu1 }
 0x6a5   : > { %v3311_v15 = vpop.f32.mrf.mxu1 }
 0x6a6   : > { %v3599_v15 = vld [vmem:[#allocation12 + $0x8] sm:$0xff]  }
 0x6a7   : > { %v994_v16 = vpop.f32.mrf.mxu1 }
 0x6a8   : > { %999 = vrot.lane.b32.xlu0 %v994_v16, %s4045_s17  ;;  %v3600_v16 = vld [vmem:[#allocation12 + $0x40] sm:$0xff]  }
 0x6a9   : > { %v3312_v17 = vpop.f32.mrf.mxu1 }
 0x6aa   : > { %v3601_v17 = vld [vmem:[#allocation12] sm:$0xff]  }
 0x71a   : > { %v1000_v18 = vpop.permute.xlu0 %999 }
 0x71b   : > { %v1002_v19 = vsel %vm882_vm12, %v991_v14, %v1000_v18  ;;  %v3598_v14 = vld [vmem:[#allocation12 + $0x48] sm:$0xff]   ;;  %v1142_v18 = vld [vmem:[#allocation9 + $0x4] ss:$8 sm:$0x3] }
 0x71c   : > { %v1020_v20 = vpack.c.bf16 %v1002_v19, %v1002_v19  ;;  %v1148_v19 = vrot.slane %v1142_v18, %v4290_v10 }
 0x71e   : > { %3330 = vmatmul.mubr.bf16.vlgmr.msra.gmra.mxu0 %v1020_v20  ;;  %v1152_v20 = vrot.slane %v1142_v18, %v4293_v11  ;;  %v3624_v18 = vld [vmem:[#allocation10 + $0x1e4] ss:$24 sps:$4 sm:$0xff]  }
 0x71f   : > { %3207 = vmatpush3.bf16.msra.mxu0 %v3587_v63  ;;  %v3608_v63 = vld [vmem:[#allocation10 + $0x2a4] ss:$24 sps:$4 sm:$0xff]  }
 0x720   : > { %3208 = vmatprep.subr.bf16.mxu0 %v3588_v0  ;;  %v3609_v0 = vld [vmem:[#allocation10 + $0x2a8] ss:$24 sps:$4 sm:$0xff]  }
 0x723   : > { %3209 = vmatpush3.bf16.msra.mxu0 %v3589_v1  ;;  %v3606_v1 = vld [vmem:[#allocation10 + $0x2a0] ss:$24 sps:$4 sm:$0xff]  }
 0x724   : > { %3210 = vmatprep.subr.bf16.mxu0 %v3590_v2 }
 0x727   : > { %3211 = vmatpush3.bf16.msra.mxu0 %v3591_v3 }
 0x728   : > { %3212 = vmatprep.subr.bf16.mxu0 %v3592_v4 }
 0x72b   : > { %3213 = vmatpush3.bf16.msra.mxu0 %v3593_v5  ;;  %v3612_v5 = vld [vmem:[#allocation10 + $0x274] ss:$24 sps:$4 sm:$0xff]  }
 0x72c   : > { %3214 = vmatprep.subr.bf16.mxu0 %v3594_v6  ;;  %v3610_v6 = vld [vmem:[#allocation10 + $0x270] ss:$24 sps:$4 sm:$0xff]  }
 0x72f   : > { %3215 = vmatpush3.bf16.msra.mxu0 %v3595_v8  ;;  %v3613_v8 = vld [vmem:[#allocation10 + $0x278] ss:$24 sps:$4 sm:$0xff]  }
 0x730   : > { %3216 = vmatprep.subr.bf16.mxu0 %v3596_v12  ;;  %v3614_v12 = vld [vmem:[#allocation10 + $0x240] ss:$24 sps:$4 sm:$0xff]  }
 0x733   : > { %3217 = vmatpush3.bf16.msra.mxu0 %v3597_v13  ;;  %v3616_v13 = vld [vmem:[#allocation10 + $0x244] ss:$24 sps:$4 sm:$0xff]  }
 0x734   : > { %3218 = vmatprep.subr.bf16.mxu0 %v3598_v14  ;;  %v3617_v14 = vld [vmem:[#allocation10 + $0x248] ss:$24 sps:$4 sm:$0xff]  }
 0x737   : > { %3219 = vmatpush3.bf16.msra.mxu0 %v3599_v15  ;;  %v3620_v15 = vld [vmem:[#allocation10 + $0x214] ss:$24 sps:$4 sm:$0xff]  }
 0x738   : > { %3220 = vmatprep.subr.bf16.mxu0 %v3600_v16  ;;  %v3618_v16 = vld [vmem:[#allocation10 + $0x210] ss:$24 sps:$4 sm:$0xff]  }
 0x73b   : > { %3221 = vmatpush3.bf16.msra.mxu0 %v3601_v17  ;;  %v3621_v17 = vld [vmem:[#allocation10 + $0x218] ss:$24 sps:$4 sm:$0xff]  }
 0x73c   : > { %3333 = vmatprep.subr.bf16.mxu0 %v4042_v34 }
 0x7de   : > { %v1103_v51 = vpop.f32.mrf.mxu0 }
 0x7df   : > { %v1104_v22 = vadd.f32 %v1103_v51, %v1019_v21 }
 0x7e0   : > { %v3331_v23 = vpop.f32.mrf.mxu0 }
 0x7e1   : > { %v1109_v24 = vadd.f32 %v1104_v22, %v4278_v7  ;;  %v3571_v7 = vld [vmem:[#allocation10 + $0xd0] ss:$24 sps:$4 sm:$0xff]  }
 0x7e2   : > { %v1106_v25 = vpop.f32.mrf.mxu0  ;;  %1242 = vmatpush1.bf16.msra.mxu1 %v3571_v7 }
 0x7e3   : > { %1112 = vadd.xlane.f32.xlu1 %v1109_v24  ;;  %1243 = vmatprep.subr.bf16.mxu1 %v3576_v41 }
 0x7e4   : > { %v3332_v26 = vpop.f32.mrf.mxu0 }
 0x7e6   : > { %1244 = vmatpush1.bf16.msra.mxu1 %v3574_v42 }
 0x7e7   : > { %1245 = vmatprep.subr.bf16.mxu1 %v3579_v43 }
 0x7ea   : > { %1246 = vmatpush1.bf16.msra.mxu1 %v3577_v44 }
 0x7eb   : > { %1247 = vmatprep.subr.bf16.mxu1 %v3582_v45 }
 0x7ee   : > { %1248 = vmatpush1.bf16.msra.mxu1 %v3580_v46 }
 0x7ef   : > { %1249 = vmatprep.subr.bf16.mxu1 %v3585_v47 }
 0x7f2   : > { %1250 = vmatpush1.bf16.msra.mxu1 %v3583_v48 }
 0x86c   : > { %v1113_v32 = vpop.xlane.xlu1 %1112 }
 0x86d   : > { %v1114_v33 = vmul.f32 0.0078125, %v1113_v32 }
 0x86f   : > { %v1115_v35 = vsub.f32 %v1109_v24, %v1114_v33 }
 0x871   : > { %v1116_v37 = vmul.f32 %v1115_v35, %v1115_v35 }
 0x873   : > { %1117 = vadd.xlane.f32.xlu0 %v1116_v37 }
 0x8fc   : > { %v1118_v49 = vpop.xlane.xlu0 %1117 }
 0x8fd   : > { %v1119_v50 = vmul.f32 0.0078125, %v1118_v49  ;;  %v1326_v49 = vld [vmem:[#allocation9 + $0x5] ss:$0 sm:$0xff] }
 0x8ff   : > { %v1120_v52 = vadd.f32 1e-12, %v1119_v50 }
 0x901   : > { %3748 = vrsqrt.f32 %v1120_v52 }
 0x90e   : > { %v3749_v55 = vpop.eup %3748 }
 0x90f   : > { %v1122_v57 = vmul.f32 %v3749_v55, %v1115_v35 }
 0x911   : > { %v1123_v59 = vmul.f32 %v1122_v57, %v1110_v56 }
 0x913   : > { %v4332_v60 = vadd.f32 %v1123_v59, %v1111_v58  ;;  %v3602_v59 = vld [vmem:[#allocation10 + $0x2d0] ss:$24 sps:$4 sm:$0xff]  }
 0x915   : > { %v1143_v61 = vpack.c.bf16 %v4332_v60, %v4332_v60 }
 0x917   : > { %1268 = vmatmul.mubr.bf16.vlgmr.msra.gmra.mxu1 %v1143_v61  ;;  %v3604_v61 = vld [vmem:[#allocation10 + $0x2d4] ss:$24 sps:$4 sm:$0xff]  }
 0x918   : > { %1693 = vmatprep.mubr.bf16.mxu1 %v4043_v54  ;;  %1661 = vmatprep.subr.bf16.mxu1 %v3604_v61 }
 0x919   : > { %1662 = vmatpush1.bf16.msra.mxu1 %v3602_v59 }
 0x91a   : > { %1663 = vmatprep.subr.bf16.mxu1 %v3608_v63 }
 0x91d   : > { %1664 = vmatpush1.bf16.msra.mxu1 %v3606_v1 }
 0x91e   : > { %1665 = vmatprep.subr.bf16.mxu1 %v3612_v5 }
 0x921   : > { %1666 = vmatpush1.bf16.msra.mxu1 %v3610_v6 }
 0x922   : > { %1667 = vmatprep.subr.bf16.mxu1 %v3616_v13 }
 0x925   : > { %1668 = vmatpush1.bf16.msra.mxu1 %v3614_v12 }
 0x926   : > { %1669 = vmatprep.subr.bf16.mxu1 %v3620_v15 }
 0x929   : > { %1670 = vmatpush1.bf16.msra.mxu1 %v3618_v16 }
 0x92a   : > { %1671 = vmatprep.subr.bf16.mxu1 %v3624_v18 }
 0x9d7   : > { %v1269_v21 = vpop.f32.mrf.mxu1 }
 0x9d8   : > { %v1270_v51 = vadd.f32 %v1269_v21, %v1148_v19  ;;  %v3622_v19 = vld [vmem:[#allocation10 + $0x1e0] ss:$24 sps:$4 sm:$0xff]   ;;  %v3628_v21 = vld [vmem:[#allocation10 + $0x1b4] ss:$24 sps:$4 sm:$0xff]  }
 0x9d9   : > { %v1271_v22 = vpop.f32.mrf.mxu1  ;;  %1672 = vmatpush1.bf16.msra.mxu1 %v3622_v19 }
 0x9da   : > { %v1276_v23 = vmul.f32 %v1270_v51, %v1270_v51  ;;  %v1272_v24 = vadd.f32 %v1271_v22, %v1152_v20  ;;  %v3625_v20 = vld [vmem:[#allocation10 + $0x1e8] ss:$24 sps:$4 sm:$0xff]   ;;  %v3629_v22 = vld [vmem:[#allocation10 + $0x1b8] ss:$24 sps:$4 sm:$0xff]   ;;  %1673 = vmatprep.subr.bf16.mxu1 %v3628_v21 }
 0x9db   : > { %v1273_v25 = vpop.f32.mrf.mxu1 }
 0x9dc   : > { %v1278_v26 = vmul.f32 %v1276_v23, %v1270_v51  ;;  %v1277_v27 = vmul.f32 %v1272_v24, %v1272_v24  ;;  %v3632_v23 = vld [vmem:[#allocation10 + $0x184] ss:$24 sps:$4 sm:$0xff]   ;;  %v3633_v25 = vld [vmem:[#allocation10 + $0x188] ss:$24 sps:$4 sm:$0xff]  }
 0x9dd   : > { %v1274_v28 = vpop.f32.mrf.mxu1 }
 0x9de   : > { %v1280_v29 = vmul.f32 0.044715, %v1278_v26  ;;  %v1279_v30 = vmul.f32 %v1277_v27, %v1272_v24 }
 0x9e0   : > { %v1282_v32 = vadd.f32 %v1280_v29, %v1270_v51  ;;  %v1281_v33 = vmul.f32 0.044715, %v1279_v30  ;;  %v1466_v30 = vld [vmem:[#allocation9 + $0x6] ss:$0 sm:$0xff] }
 0x9e2   : > { %v1284_v35 = vmul.f32 0.7978846, %v1282_v32  ;;  %v1283_v37 = vadd.f32 %v1281_v33, %v1272_v24  ;;  %v1467_v33 = vld [vmem:[#allocation9 + $0x7] ss:$0 sm:$0xff] }
 0x9e4   : > { %3750 = vtanh.f32 %v1284_v35  ;;  %v1285_v38 = vmul.f32 0.7978846, %v1283_v37 }
 0x9e6   : > { %3752 = vtanh.f32 %v1285_v38 }
 0x9f1   : > { %v3751_v39 = vpop.eup %3750 }
 0x9f2   : > { %v1288_v7 = vadd.f32 1.0, %v3751_v39  ;;  %v1515_v39 = vld [vmem:[#allocation9 + $0x18] ss:$8 sm:$0x7] }
 0x9f3   : > { %v3753_v40 = vpop.eup %3752 }
 0x9f4   : > { %v1289_v41 = vadd.f32 1.0, %v3753_v40  ;;  %v1290_v42 = vmul.f32 0.5, %v1288_v7  ;;  %v1521_v7 = vrot.slane %v1515_v39, %v4290_v10  ;;  %v1525_v40 = vrot.slane %v1515_v39, %v4293_v11 }
 0x9f6   : > { %v1291_v43 = vmul.f32 0.5, %v1289_v41  ;;  %v1292_v44 = vmul.f32 %v1290_v42, %v1270_v51  ;;  %v3626_v51 = vld [vmem:[#allocation10 + $0x1b0] ss:$24 sps:$4 sm:$0xff]  }
 0x9f7   : > { %1674 = vmatpush1.bf16.msra.mxu1 %v3626_v51 }
 0x9f8   : > { %v1293_v45 = vmul.f32 %v1291_v43, %v1272_v24  ;;  %v1327_v47 = vpack.c.bf16 %v1292_v44, %v1292_v44  ;;  %v3630_v24 = vld [vmem:[#allocation10 + $0x180] ss:$24 sps:$4 sm:$0xff]   ;;  %1675 = vmatprep.subr.bf16.mxu1 %v3632_v23 }
 0x9fa   : > { %v1328_v46 = vpack.c.bf16 %v1293_v45, %v1293_v45 }
 0x9fb   : > { %1676 = vmatpush1.bf16.msra.mxu1 %v3630_v24 }
 0x9fc   : > { %1457 = vmatprep.mubr.bf16.mxu0 %v1328_v46  ;;  %3353 = vmatprep.subr.bf16.mxu1 %v4042_v34 }
 0x9fd   : > { %1458 = vmatmul.mubr.bf16.vlgmr.msra.gmra.mxu0 %v1327_v47 }
 0x9fe   : > { %3349 = vmatprep.mubr.msk.bf16.mxu0 %vm4044_vm11, %v4042_v34  ;;  %3334 = vmatpush3.bf16.msra.mxu0 %v3605_v62 }
 0x9ff   : > { %3335 = vmatprep.subr.bf16.mxu0 %v4042_v34 }
 0xa02   : > { %3336 = vmatpush3.bf16.msra.mxu0 %v3609_v0 }
 0xa03   : > { %3337 = vmatprep.subr.bf16.mxu0 %v4042_v34 }
 0xa06   : > { %3338 = vmatpush3.bf16.msra.mxu0 %v3613_v8 }
 0xa07   : > { %3339 = vmatprep.subr.bf16.mxu0 %v4042_v34 }
 0xa0a   : > { %3340 = vmatpush3.bf16.msra.mxu0 %v3617_v14 }
 0xa0b   : > { %3341 = vmatprep.subr.bf16.mxu0 %v4042_v34 }
 0xa0e   : > { %3342 = vmatpush3.bf16.msra.mxu0 %v3621_v17 }
 0xa0f   : > { %3343 = vmatprep.subr.bf16.mxu0 %v4042_v34 }
 0xa12   : > { %3344 = vmatpush3.bf16.msra.mxu0 %v3625_v20 }
 0xa13   : > { %3345 = vmatprep.subr.bf16.mxu0 %v4042_v34 }
 0xa16   : > { %3346 = vmatpush3.bf16.msra.mxu0 %v3629_v22 }
 0xa17   : > { %3347 = vmatprep.subr.bf16.mxu0 %v4042_v34 }
 0xa1a   : > { %3348 = vmatpush3.bf16.msra.mxu0 %v3633_v25 }
 0xabd   : > { %v3222_v48 = vpop.f32.mrf.mxu0 }
 0xabf   : > { %v3223_v50 = vpop.f32.mrf.mxu0 }
 0xac0   : > { %v3224_v52 = vadd.f32 %v3223_v50, %v3222_v48 }
 0xac1   : > { %v3225_v55 = vpop.f32.mrf.mxu0 }
 0xac2   : > { %v1460_v56 = vadd.f32 %v3224_v52, %v1326_v49 }
 0xac3   : > { %v3226_v57 = vpop.f32.mrf.mxu0 }
 0xac4   : > { %v1465_v58 = vadd.f32 %v1460_v56, %v4332_v60 }
 0xac6   : > { %1468 = vadd.xlane.f32.xlu1 %v1465_v58 }
 0xb4f   : > { %v1469_v2 = vpop.xlane.xlu1 %1468 }
 0xb50   : > { %v1470_v3 = vmul.f32 0.0078125, %v1469_v2 }
 0xb52   : > { %v1471_v60 = vsub.f32 %v1465_v58, %v1470_v3 }
 0xb54   : > { %v1472_v4 = vmul.f32 %v1471_v60, %v1471_v60 }
 0xb56   : > { %1473 = vadd.xlane.f32.xlu1 %v1472_v4 }
 0xbdf   : > { %v1474_v26 = vpop.xlane.xlu1 %1473 }
 0xbe0   : > { %v1475_v27 = vmul.f32 0.0078125, %v1474_v26  ;;  %v3634_v26 = vld [vmem:[#allocation10 + $0x2dc] ss:$24 sps:$4 sm:$0xff]  }
 0xbe2   : > { %v1476_v28 = vadd.f32 1e-12, %v1475_v27  ;;  %v3635_v27 = vld [vmem:[#allocation10 + $0x2ac] ss:$24 sps:$4 sm:$0xff]  }
 0xbe4   : > { %3754 = vrsqrt.f32 %v1476_v28  ;;  %v3636_v28 = vld [vmem:[#allocation10 + $0x27c] ss:$24 sps:$4 sm:$0xff]  }
 0xbf1   : > { %v3755_v29 = vpop.eup %3754 }
 0xbf2   : > { %v1478_v32 = vmul.f32 %v3755_v29, %v1471_v60  ;;  %v3637_v29 = vld [vmem:[#allocation10 + $0x24c] ss:$24 sps:$4 sm:$0xff]  }
 0xbf4   : > { %v1479_v35 = vmul.f32 %v1478_v32, %v1466_v30  ;;  %v3638_v30 = vld [vmem:[#allocation10 + $0x21c] ss:$24 sps:$4 sm:$0xff]   ;;  %v3639_v32 = vld [vmem:[#allocation10 + $0x1ec] ss:$24 sps:$4 sm:$0xff]  }
 0xbf6   : > { %v4351_v37 = vadd.f32 %v1479_v35, %v1467_v33  ;;  %v3640_v33 = vld [vmem:[#allocation10 + $0x1bc] ss:$24 sps:$4 sm:$0xff]   ;;  %v3641_v35 = vld [vmem:[#allocation10 + $0x18c] ss:$24 sps:$4 sm:$0xff]  }
 0xbf8   : > { %v1516_v38 = vpack.c.bf16 %v4351_v37, %v4351_v37 }
 0xbfa   : > { %1694 = vmatmul.mubr.bf16.vlgmr.msra.gmra.mxu1 %v1516_v38  ;;  %3350 = vmatmul.mubr.bf16.vlgmr.msra.gmra.mxu0 %v1516_v38 }
 0xbfb   : > { %3355 = vmatprep.mubr.msk.bf16.mxu1 %vm4044_vm11, %v4042_v34  ;;  %2141 = vmatprep.mubr.bf16.mxu0 %v4043_v54 }
 0xcba   : > { %v1695_v41 = vpop.f32.mrf.mxu1  ;;  %v1736_v42 = vpop.f32.mrf.mxu0 }
 0xcbb   : > { %v1696_v45 = vadd.f32 %v1695_v41, %v1521_v7 }
 0xcbc   : > { %v1697_v43 = vpop.f32.mrf.mxu1  ;;  %v3351_v44 = vpop.f32.mrf.mxu0 }
 0xcbd   : > { %v1698_v46 = vadd.f32 %v1697_v43, %v1525_v40  ;;  %v1742_v52 = vmul.f32 0.125, %v1696_v45  ;;  %v1893_v44 = vld [vmem:[#allocation9 + $0x19] ss:$0 sm:$0xff] }
 0xcbe   : > { %v1699_v47 = vpop.f32.mrf.mxu1  ;;  %v1739_v48 = vpop.f32.mrf.mxu0 }
 0xcbf   : > { %1749 = vrot.lane.b32.xlu1 %v1698_v46, %s4045_s17 }
 0xcc0   : > { %v1700_v49 = vpop.f32.mrf.mxu1  ;;  %v3352_v50 = vpop.f32.mrf.mxu0 }
 0xcc3   : > { %1744 = vrot.lane.b32.xlu1 %v1742_v52, %s4045_s17 }
 0xd31   : > { %v1750_v55 = vpop.permute.xlu1 %1749 }
 0xd32   : > { %v1752_v56 = vpack.c.bf16 %v1750_v55, %v1698_v46  ;;  %v3644_v55 = vld [vmem:[#allocation10 + $0x2e4] ss:$24 sps:$4 sm:$0xff]  }
 0xd33   : > { %2109 = vmatprep.subr.bf16.mxu0 %v3644_v55 }
 0xd34   : > { %v1762_v57 = vsel %vm882_vm12, %v1752_v56, 0  ;;  %v3647_v56 = vld [vmem:[#allocation10 + $0x2b4] ss:$24 sps:$4 sm:$0xff]  }
 0xd35   : > { %3354 = vmatpush3.bf16.xpose.msra.mxu1 %v1762_v57  ;;  %v1745_v58 = vpop.permute.xlu1 %1744  ;;  %v3645_v57 = vld [vmem:[#allocation10 + $0x2b0] ss:$24 sps:$4 sm:$0xff]  }
 0xd36   : > { %3359 = vmatprep.subr.bf16.mxu1 %v4042_v34  ;;  %v1747_v59 = vpack.c.bf16 %v1745_v58, %v1742_v52  ;;  %v3642_v52 = vld [vmem:[#allocation10 + $0x2e0] ss:$24 sps:$4 sm:$0xff]  }
 0xd37   : > { %2110 = vmatpush1.bf16.msra.mxu0 %v3642_v52 }
 0xd38   : > { %2111 = vmatprep.subr.bf16.mxu0 %v3647_v56 }
 0xd3b   : > { %2112 = vmatpush1.bf16.msra.mxu0 %v3645_v57 }
 0xd3c   : > { %3356 = vmatmul.mubr.msk.bf16.vlgmr.msra.gmra.mxu1 %vm882_vm12, %v1747_v59 }
 0xd3d   : > { %3361 = vmatprep.mubr.msk.bf16.mxu1 %vm4044_vm11, %v4042_v34 }
 0xdfc   : > { %v1798_v61 = vpop.f32.mrf.mxu1 }
 0xdfd   : > { %v1799_v62 = vadd.f32 %v1798_v61, %v4304_v31 }
 0xdfe   : > { %v3357_v63 = vpop.f32.mrf.mxu1 }
 0xdff   : > { %v1805_v0 = vsel %vm930_vm14, %v1799_v62, -inf  ;;  %v3650_v63 = vld [vmem:[#allocation10 + $0x284] ss:$24 sps:$4 sm:$0xff]  }
 0xe00   : > { %1806 = vmax.xlane.f32.xlu0 %v1805_v0  ;;  %v1801_v1 = vpop.f32.mrf.mxu1  ;;  %v3648_v0 = vld [vmem:[#allocation10 + $0x280] ss:$24 sps:$4 sm:$0xff]   ;;  %2113 = vmatprep.subr.bf16.mxu0 %v3650_v63 }
 0xe01   : > { %v1802_v2 = vadd.f32 %v1801_v1, %v4308_v36  ;;  %v1529_v36 = vrot.slane %v1515_v39, %v4316_v53  ;;  %2114 = vmatpush1.bf16.msra.mxu0 %v3648_v0  ;;  %v3653_v1 = vld [vmem:[#allocation10 + $0x254] ss:$24 sps:$4 sm:$0xff]  }
 0xe02   : > { %v3358_v3 = vpop.f32.mrf.mxu1  ;;  %2115 = vmatprep.subr.bf16.mxu0 %v3653_v1 }
 0xe03   : > { %v1808_v60 = vsel %vm930_vm14, %v1802_v2, -inf  ;;  %v1737_v17 = vadd.f32 %v1736_v42, %v1529_v36  ;;  %v3654_v3 = vld [vmem:[#allocation10 + $0x220] ss:$24 sps:$4 sm:$0xff]  }
 0xe04   : > { %1809 = vmax.xlane.f32.xlu1 %v1808_v60  ;;  %v3659_v60 = vld [vmem:[#allocation10 + $0x1f4] ss:$24 sps:$4 sm:$0xff]  }
 0xe89   : > { %v1807_v4 = vpop.xlane.xlu0 %1806 }
 0xe8a   : > { %v1811_v5 = vsub.f32 %v1799_v62, %v1807_v4  ;;  %v3657_v4 = vld [vmem:[#allocation10 + $0x1f0] ss:$24 sps:$4 sm:$0xff]  }
 0xe8c   : > { %v1813_v6 = vmul.f32 1.442695, %v1811_v5  ;;  %v3662_v5 = vld [vmem:[#allocation10 + $0x1c4] ss:$24 sps:$4 sm:$0xff]  }
 0xe8d   : > { %v1810_v8 = vpop.xlane.xlu1 %1809 }
 0xe8e   : > { %3756 = vpow2.f32 %v1813_v6  ;;  %v1812_v12 = vsub.f32 %v1802_v2, %v1810_v8  ;;  %v3656_v2 = vld [vmem:[#allocation10 + $0x224] ss:$24 sps:$4 sm:$0xff]   ;;  %v3660_v6 = vld [vmem:[#allocation10 + $0x1c0] ss:$24 sps:$4 sm:$0xff]   ;;  %v3665_v8 = vld [vmem:[#allocation10 + $0x194] ss:$24 sps:$4 sm:$0xff]  }
 0xe90   : > { %v1815_v13 = vmul.f32 1.442695, %v1812_v12  ;;  %v3663_v12 = vld [vmem:[#allocation10 + $0x190] ss:$24 sps:$4 sm:$0xff]  }
 0xe92   : > { %3758 = vpow2.f32 %v1815_v13 }
 0xe9b   : > { %v3757_v31 = vpop.eup %3756 }
 0xe9c   : > { %v1817_v14 = vsel %vm930_vm14, %v3757_v31, 0.0 }
 0xe9d   : > { %1818 = vadd.xlane.f32.xlu0 %v1817_v14 }
 0xe9f   : > { %v3759_v15 = vpop.eup %3758 }
 0xea0   : > { %v1820_v16 = vsel %vm930_vm14, %v3759_v15, 0.0 }
 0xea1   : > { %1821 = vadd.xlane.f32.xlu0 %v1820_v16  ;;  %v1984_v16 = vld [vmem:[#allocation9 + $0x1a] ss:$0 sm:$0xff] }
 0xeb7   : > { %1754 = vrot.lane.b32.xlu0 %v1737_v17, %s4045_s17 }
 0xf26   : > { %v1819_v18 = vpop.xlane.xlu0 %1818 }
 0xf27   : > { %3760 = vrcp.f32 %v1819_v18 }
 0xf2a   : > { %v1822_v19 = vpop.xlane.xlu0 %1821 }
 0xf2b   : > { %3762 = vrcp.f32 %v1822_v19 }
 0xf2e   : > { %v1755_v20 = vpop.permute.xlu0 %1754 }
 0xf2f   : > { %v1757_v21 = vpack.c.bf16 %v1755_v20, %v1737_v17  ;;  %v1985_v17 = vld [vmem:[#allocation9 + $0x1b] ss:$0 sm:$0xff] }
 0xf31   : > { %3360 = vmatpush3.bf16.msra.mxu1 %v1757_v21  ;;  %v3666_v21 = vld [vmem:[#allocation12 + $0xf8] sm:$0xff]  }
 0xf32   : > { %3365 = vmatprep.subr.bf16.mxu1 %v4042_v34 }
 0xf34   : > { %v3761_v51 = vpop.eup %3760 }
 0xf35   : > { %v1825_v23 = vmul.f32 %v3761_v51, %v3757_v31  ;;  %v3667_v51 = vld [vmem:[#allocation12 + $0xb8] sm:$0xff]  }
 0xf38   : > { %v3763_v22 = vpop.eup %3762 }
 0xf39   : > { %v1826_v24 = vmul.f32 %v3763_v22, %v3759_v15  ;;  %v3668_v22 = vld [vmem:[#allocation12 + $0xf0] sm:$0xff]  }
 0xf3b   : > { %v1827_v25 = vpack.c.bf16 %v1826_v24, %v1825_v23  ;;  %v3669_v23 = vld [vmem:[#allocation12 + $0xb0] sm:$0xff]   ;;  %v3670_v24 = vld [vmem:[#allocation12 + $0xe8] sm:$0xff]  }
 0xf3d   : > { %3362 = vmatmul.mubr.msk.bf16.vlgmr.msra.gmra.mxu1 %vm930_vm14, %v1827_v25  ;;  %v3671_v25 = vld [vmem:[#allocation12 + $0xa8] sm:$0xff]  }
 0xf3e   : > { %3381 = vmatprep.mubr.msk.bf16.mxu1 %vm4044_vm11, %v4042_v34  ;;  %3366 = vmatpush3.bf16.msra.mxu1 %v3634_v26  ;;  %v3672_v26 = vld [vmem:[#allocation12 + $0xe0] sm:$0xff]  }
 0xf3f   : > { %3367 = vmatprep.subr.bf16.mxu1 %v4042_v34 }
 0xf42   : > { %3368 = vmatpush3.bf16.msra.mxu1 %v3635_v27  ;;  %v3673_v27 = vld [vmem:[#allocation12 + $0xa0] sm:$0xff]  }
 0xf43   : > { %3369 = vmatprep.subr.bf16.mxu1 %v4042_v34 }
 0xf46   : > { %3370 = vmatpush3.bf16.msra.mxu1 %v3636_v28  ;;  %v3674_v28 = vld [vmem:[#allocation12 + $0xd8] sm:$0xff]  }
 0xf47   : > { %3371 = vmatprep.subr.bf16.mxu1 %v4042_v34 }
 0xf4a   : > { %3372 = vmatpush3.bf16.msra.mxu1 %v3637_v29  ;;  %v3675_v29 = vld [vmem:[#allocation12 + $0x98] sm:$0xff]  }
 0xf4b   : > { %3373 = vmatprep.subr.bf16.mxu1 %v4042_v34 }
 0xf4e   : > { %3374 = vmatpush3.bf16.msra.mxu1 %v3638_v30  ;;  %v3676_v30 = vld [vmem:[#allocation12 + $0xd0] sm:$0xff]  }
 0xf4f   : > { %3375 = vmatprep.subr.bf16.mxu1 %v4042_v34 }
 0xf52   : > { %3376 = vmatpush3.bf16.msra.mxu1 %v3639_v32  ;;  %v3677_v32 = vld [vmem:[#allocation12 + $0x90] sm:$0xff]  }
 0xf53   : > { %3377 = vmatprep.subr.bf16.mxu1 %v4042_v34 }
 0xf56   : > { %3378 = vmatpush3.bf16.msra.mxu1 %v3640_v33  ;;  %v3678_v33 = vld [vmem:[#allocation12 + $0xc8] sm:$0xff]  }
 0xf57   : > { %3379 = vmatprep.subr.bf16.mxu1 %v4042_v34 }
 0xf5a   : > { %3380 = vmatpush3.bf16.msra.mxu1 %v3641_v35  ;;  %v3679_v35 = vld [vmem:[#allocation12 + $0x88] sm:$0xff]  }
 0xf5b   : > { %3250 = vmatprep.subr.bf16.mxu1 %v3666_v21 }
 0xffd   : > { %v1865_v38 = vpop.f32.mrf.mxu1 }
 0xfff   : > { %v3363_v39 = vpop.f32.mrf.mxu1 }
0x1000   : > { %v3681_v39 = vld [vmem:[#allocation12 + $0x80] sm:$0xff]  }
0x1001   : > { %v1868_v7 = vpop.f32.mrf.mxu1 }
0x1002   : > { %1873 = vrot.lane.b32.xlu0 %v1868_v7, %s4045_s17  ;;  %v2016_v7 = vld [vmem:[#allocation9 + $0x1c] ss:$8 sm:$0x3] }
0x1003   : > { %v3364_v40 = vpop.f32.mrf.mxu1 }
0x1004   : > { %v2022_v40 = vrot.slane %v2016_v7, %v4290_v10 }
0x1074   : > { %v1874_v41 = vpop.permute.xlu0 %1873 }
0x1075   : > { %v1876_v42 = vsel %vm882_vm12, %v1865_v38, %v1874_v41  ;;  %v3680_v38 = vld [vmem:[#allocation12 + $0xc0] sm:$0xff]   ;;  %v2026_v41 = vrot.slane %v2016_v7, %v4293_v11 }
0x1076   : > { %v1894_v43 = vpack.c.bf16 %v1876_v42, %v1876_v42 }
0x1078   : > { %3382 = vmatmul.mubr.bf16.vlgmr.msra.gmra.mxu1 %v1894_v43 }
0x1079   : > { %3251 = vmatpush3.bf16.msra.mxu1 %v3667_v51 }
0x107a   : > { %3252 = vmatprep.subr.bf16.mxu1 %v3668_v22  ;;  %v3684_v22 = vld [vmem:[#allocation13 + $0xc8] ss:$20 sps:$4 sm:$0xff]  }
0x107d   : > { %3253 = vmatpush3.bf16.msra.mxu1 %v3669_v23  ;;  %v3685_v23 = vld [vmem:[#allocation13 + $0xa0] ss:$20 sps:$4 sm:$0xff]  }
0x107e   : > { %3254 = vmatprep.subr.bf16.mxu1 %v3670_v24  ;;  %v3687_v24 = vld [vmem:[#allocation13 + $0x50] ss:$20 sps:$4 sm:$0xff]  }
0x1081   : > { %3255 = vmatpush3.bf16.msra.mxu1 %v3671_v25  ;;  %v3688_v25 = vld [vmem:[#allocation13 + $0x28] ss:$20 sps:$4 sm:$0xff]  }
0x1082   : > { %3256 = vmatprep.subr.bf16.mxu1 %v3672_v26  ;;  %v3689_v26 = vld [vmem:[#allocation13] ss:$20 sps:$4 sm:$0xff]  }
0x1085   : > { %3257 = vmatpush3.bf16.msra.mxu1 %v3673_v27 }
0x1086   : > { %3258 = vmatprep.subr.bf16.mxu1 %v3674_v28 }
0x1089   : > { %3259 = vmatpush3.bf16.msra.mxu1 %v3675_v29 }
0x108a   : > { %3260 = vmatprep.subr.bf16.mxu1 %v3676_v30 }
0x108d   : > { %3261 = vmatpush3.bf16.msra.mxu1 %v3677_v32  ;;  %v2341_v32 = vld [vmem:[#allocation9 + $0x1e] ss:$0 sm:$0xff] }
0x108e   : > { %3262 = vmatprep.subr.bf16.mxu1 %v3678_v33 }
0x1091   : > { %3263 = vmatpush3.bf16.msra.mxu1 %v3679_v35  ;;  %v2342_v35 = vld [vmem:[#allocation9 + $0x1f] ss:$0 sm:$0xff] }
0x1092   : > { %3264 = vmatprep.subr.bf16.mxu1 %v3680_v38 }
0x1095   : > { %3265 = vmatpush3.bf16.msra.mxu1 %v3681_v39 }
0x1138   : > { %v1977_v45 = vpop.f32.mrf.mxu1 }
0x1139   : > { %v1978_v46 = vadd.f32 %v1977_v45, %v1893_v44 }
0x113a   : > { %v3383_v47 = vpop.f32.mrf.mxu1 }
0x113b   : > { %v1983_v48 = vadd.f32 %v1978_v46, %v4351_v37  ;;  %v3651_v37 = vld [vmem:[#allocation10 + $0x250] ss:$24 sps:$4 sm:$0xff]  }
0x113c   : > { %v1980_v49 = vpop.f32.mrf.mxu1  ;;  %2116 = vmatpush1.bf16.msra.mxu0 %v3651_v37 }
0x113d   : > { %1986 = vadd.xlane.f32.xlu1 %v1983_v48  ;;  %2117 = vmatprep.subr.bf16.mxu0 %v3656_v2 }
0x113e   : > { %v3384_v50 = vpop.f32.mrf.mxu1 }
0x1140   : > { %2118 = vmatpush1.bf16.msra.mxu0 %v3654_v3 }
0x1141   : > { %2119 = vmatprep.subr.bf16.mxu0 %v3659_v60 }
0x1144   : > { %2120 = vmatpush1.bf16.msra.mxu0 %v3657_v4 }
0x1145   : > { %2121 = vmatprep.subr.bf16.mxu0 %v3662_v5 }
0x1148   : > { %2122 = vmatpush1.bf16.msra.mxu0 %v3660_v6 }
0x1149   : > { %2123 = vmatprep.subr.bf16.mxu0 %v3665_v8  ;;  %v2201_v8 = vld [vmem:[#allocation9 + $0x1d] ss:$0 sm:$0xff] }
0x114c   : > { %2124 = vmatpush1.bf16.msra.mxu0 %v3663_v12 }
0x114d   : > { %3385 = vmatprep.subr.bf16.mxu0 %v4042_v34 }
0x11c6   : > { %v1987_v58 = vpop.xlane.xlu1 %1986 }
0x11c7   : > { %v1988_v59 = vmul.f32 0.0078125, %v1987_v58 }
0x11c9   : > { %v1989_v61 = vsub.f32 %v1983_v48, %v1988_v59 }
0x11cb   : > { %v1990_v62 = vmul.f32 %v1989_v61, %v1989_v61 }
0x11cd   : > { %1991 = vadd.xlane.f32.xlu0 %v1990_v62 }
0x1256   : > { %v1992_v13 = vpop.xlane.xlu0 %1991 }
0x1257   : > { %v1993_v31 = vmul.f32 0.0078125, %v1992_v13 }
0x1259   : > { %v1994_v14 = vadd.f32 1e-12, %v1993_v31 }
0x125b   : > { %3764 = vrsqrt.f32 %v1994_v14 }
0x1268   : > { %v3765_v15 = vpop.eup %3764 }
0x1269   : > { %v1996_v36 = vmul.f32 %v3765_v15, %v1989_v61 }
0x126b   : > { %v1997_v18 = vmul.f32 %v1996_v36, %v1984_v16  ;;  %v3682_v36 = vld [vmem:[#allocation13 + $0x118] ss:$20 sps:$4 sm:$0xff]  }
0x126d   : > { %v4390_v19 = vadd.f32 %v1997_v18, %v1985_v17  ;;  %v3683_v17 = vld [vmem:[#allocation13 + $0xf0] ss:$20 sps:$4 sm:$0xff]  }
0x126f   : > { %v2017_v20 = vpack.c.bf16 %v4390_v19, %v4390_v19 }
0x1271   : > { %2142 = vmatmul.mubr.bf16.vlgmr.msra.gmra.mxu0 %v2017_v20 }
0x1272   : > { %3401 = vmatprep.mubr.msk.bf16.mxu0 %vm4044_vm11, %v4042_v34  ;;  %3386 = vmatpush3.bf16.msra.mxu0 %v3682_v36  ;;  %v3717_v36 = vld [vmem:[#allocation13 + $0x84] ss:$20 sps:$4 sm:$0xff]  }
0x1273   : > { %3387 = vmatprep.subr.bf16.mxu0 %v4042_v34 }
0x1276   : > { %3388 = vmatpush3.bf16.msra.mxu0 %v3683_v17  ;;  %v3722_v17 = vld [vmem:[#allocation13 + $0x58] ss:$20 sps:$4 sm:$0xff]  }
0x1277   : > { %3389 = vmatprep.subr.bf16.mxu0 %v4042_v34 }
0x127a   : > { %3390 = vmatpush3.bf16.msra.mxu0 %v3684_v22  ;;  %v3731_v22 = vld [vmem:[#allocation13 + $0x38] ss:$20 sps:$4 sm:$0xff]  }
0x127b   : > { %3391 = vmatprep.subr.bf16.mxu0 %v4042_v34 }
0x127e   : > { %3392 = vmatpush3.bf16.msra.mxu0 %v3685_v23  ;;  %v3726_v23 = vld [vmem:[#allocation13 + $0x2c] ss:$20 sps:$4 sm:$0xff]  }
0x127f   : > { %3393 = vmatprep.subr.bf16.mxu0 %v4042_v34 }
0x1331   : > { %v2143_v42 = vpop.f32.mrf.mxu0 }
0x1332   : > { %v2144_v43 = vadd.f32 %v2143_v42, %v2022_v40  ;;  %v2372_v40 = vld [vmem:[#allocation7 + $0x43] ss:$0 sm:$0xff] }
0x1333   : > { %v2145_v44 = vpop.f32.mrf.mxu0 }
0x1334   : > { %v2150_v45 = vmul.f32 %v2144_v43, %v2144_v43  ;;  %v2146_v46 = vadd.f32 %v2145_v44, %v2026_v41 }
0x1335   : > { %v2147_v47 = vpop.f32.mrf.mxu0 }
0x1336   : > { %v2152_v48 = vmul.f32 %v2150_v45, %v2144_v43  ;;  %v2151_v49 = vmul.f32 %v2146_v46, %v2146_v46 }
0x1337   : > { %v2148_v50 = vpop.f32.mrf.mxu0 }
0x1338   : > { %v2154_v52 = vmul.f32 0.044715, %v2152_v48  ;;  %v2153_v55 = vmul.f32 %v2151_v49, %v2146_v46 }
0x133a   : > { %v2156_v56 = vadd.f32 %v2154_v52, %v2144_v43  ;;  %v2155_v57 = vmul.f32 0.044715, %v2153_v55 }
0x133c   : > { %v2158_v58 = vmul.f32 0.7978846, %v2156_v56  ;;  %v2157_v59 = vadd.f32 %v2155_v57, %v2146_v46  ;;  %v3690_v57 = vld [vmem:[#allocation13 + $0x11c] ss:$20 sps:$4 sm:$0xff]  }
0x133e   : > { %3766 = vtanh.f32 %v2158_v58  ;;  %v2159_v61 = vmul.f32 0.7978846, %v2157_v59  ;;  %v3692_v58 = vld [vmem:[#allocation13 + $0x120] ss:$20 sps:$4 sm:$0xff]   ;;  %v3695_v59 = vld [vmem:[#allocation13 + $0x128] ss:$20 sps:$4 sm:$0xff]  }
0x133f   : > { %2702 = vmatprep.subr.bf16.mxu1 %v3692_v58 }
0x1340   : > { %3768 = vtanh.f32 %v2159_v61  ;;  %v3698_v61 = vld [vmem:[#allocation13 + $0xf8] ss:$20 sps:$4 sm:$0xff]  }
0x134b   : > { %v3767_v62 = vpop.eup %3766 }
0x134c   : > { %v2162_v63 = vadd.f32 1.0, %v3767_v62  ;;  %v3701_v62 = vld [vmem:[#allocation13 + $0x100] ss:$20 sps:$4 sm:$0xff]  }
0x134d   : > { %v3769_v0 = vpop.eup %3768 }
0x134e   : > { %v2163_v37 = vadd.f32 1.0, %v3769_v0  ;;  %v2164_v1 = vmul.f32 0.5, %v2162_v63  ;;  %v3696_v63 = vld [vmem:[#allocation13 + $0xf4] ss:$20 sps:$4 sm:$0xff]   ;;  %v3699_v0 = vld [vmem:[#allocation13 + $0xfc] ss:$20 sps:$4 sm:$0xff]  }
0x1350   : > { %v2165_v2 = vmul.f32 0.5, %v2163_v37  ;;  %v2166_v3 = vmul.f32 %v2164_v1, %v2144_v43 }
0x1352   : > { %v2167_v60 = vmul.f32 %v2165_v2, %v2146_v46  ;;  %v2202_v5 = vpack.c.bf16 %v2166_v3, %v2166_v3 }
0x1354   : > { %v2203_v4 = vpack.c.bf16 %v2167_v60, %v2167_v60  ;;  %v3704_v60 = vld [vmem:[#allocation13 + $0xd0] ss:$20 sps:$4 sm:$0xff]  }
0x1356   : > { %2332 = vmatprep.mubr.bf16.mxu1 %v2203_v4  ;;  %v3707_v4 = vld [vmem:[#allocation13 + $0xd8] ss:$20 sps:$4 sm:$0xff]  }
0x1357   : > { %2333 = vmatmul.mubr.bf16.vlgmr.msra.gmra.mxu1 %v2202_v5  ;;  %v3702_v5 = vld [vmem:[#allocation13 + $0xcc] ss:$20 sps:$4 sm:$0xff]  }
0x1358   : > { %2734 = vmatprep.mubr.bf16.mxu1 %v4043_v54  ;;  %2703 = vmatpush1.bf16.msra.mxu1 %v3690_v57 }
0x1359   : > { %2704 = vmatprep.subr.bf16.mxu1 %v3698_v61 }
0x135c   : > { %2705 = vmatpush1.bf16.msra.mxu1 %v3696_v63 }
0x135d   : > { %2706 = vmatprep.subr.bf16.mxu1 %v3704_v60 }
0x1360   : > { %2707 = vmatpush1.bf16.msra.mxu1 %v3702_v5 }
0x1417   : > { %v3266_v6 = vpop.f32.mrf.mxu1 }
0x1419   : > { %v3267_v12 = vpop.f32.mrf.mxu1 }
0x141a   : > { %v3268_v13 = vadd.f32 %v3267_v12, %v3266_v6  ;;  %v3705_v6 = vld [vmem:[#allocation13 + $0xd4] ss:$20 sps:$4 sm:$0xff]  }
0x141b   : > { %v3269_v31 = vpop.f32.mrf.mxu1  ;;  %v3710_v12 = vld [vmem:[#allocation13 + $0xa8] ss:$20 sps:$4 sm:$0xff]  }
0x141c   : > { %v2335_v14 = vadd.f32 %v3268_v13, %v2201_v8  ;;  %v3708_v8 = vld [vmem:[#allocation13 + $0xa4] ss:$20 sps:$4 sm:$0xff]   ;;  %v3711_v13 = vld [vmem:[#allocation13 + $0xac] ss:$20 sps:$4 sm:$0xff]   ;;  %2708 = vmatprep.subr.bf16.mxu1 %v3710_v12 }
0x141d   : > { %v3270_v15 = vpop.f32.mrf.mxu1  ;;  %v3713_v31 = vld [vmem:[#allocation13 + $0xb0] ss:$20 sps:$4 sm:$0xff]   ;;  %2709 = vmatpush1.bf16.msra.mxu1 %v3708_v8 }
0x141e   : > { %v2340_v16 = vadd.f32 %v2335_v14, %v4390_v19  ;;  %v3686_v19 = vld [vmem:[#allocation13 + $0x78] ss:$20 sps:$4 sm:$0xff]   ;;  %v3716_v14 = vld [vmem:[#allocation13 + $0x80] ss:$20 sps:$4 sm:$0xff]   ;;  %v3719_v15 = vld [vmem:[#allocation13 + $0x88] ss:$20 sps:$4 sm:$0xff]  }
0x141f   : > { %3394 = vmatpush3.bf16.msra.mxu0 %v3686_v19  ;;  %2710 = vmatprep.subr.bf16.mxu1 %v3716_v14  ;;  %v3729_v19 = vld [vmem:[#allocation13 + $0x34] ss:$20 sps:$4 sm:$0xff]  }
0x1420   : > { %2343 = vadd.xlane.f32.xlu1 %v2340_v16  ;;  %3395 = vmatprep.subr.bf16.mxu0 %v4042_v34 }
0x1423   : > { %3396 = vmatpush3.bf16.msra.mxu0 %v3687_v24  ;;  %v3734_v24 = vld [vmem:[#allocation13 + $0x8] ss:$20 sps:$4 sm:$0xff]  }
0x1424   : > { %3397 = vmatprep.subr.bf16.mxu0 %v4042_v34 }
0x1427   : > { %3398 = vmatpush3.bf16.msra.mxu0 %v3688_v25  ;;  %v3737_v25 = vld [vmem:[#allocation13 + $0x10] ss:$20 sps:$4 sm:$0xff]  }
0x1428   : > { %3399 = vmatprep.subr.bf16.mxu0 %v4042_v34 }
0x142b   : > { %3400 = vmatpush3.bf16.msra.mxu0 %v3689_v26  ;;  %v3732_v26 = vld [vmem:[#allocation13 + $0x4] ss:$20 sps:$4 sm:$0xff]  }
0x142c   : > { %2743 = vmatprep.subr.bf16.mxu0 %v3695_v59 }
0x14a9   : > { %v2344_v18 = vpop.xlane.xlu1 %2343 }
0x14aa   : > { %v2345_v20 = vmul.f32 0.0078125, %v2344_v18  ;;  %v3725_v18 = vld [vmem:[#allocation13 + $0x60] ss:$20 sps:$4 sm:$0xff]  }
0x14ac   : > { %v2346_v21 = vsub.f32 %v2340_v16, %v2345_v20  ;;  %v3714_v16 = vld [vmem:[#allocation13 + $0x7c] ss:$20 sps:$4 sm:$0xff]   ;;  %v3720_v20 = vld [vmem:[#allocation13 + $0x54] ss:$20 sps:$4 sm:$0xff]  }
0x14ad   : > { %2711 = vmatpush1.bf16.msra.mxu1 %v3714_v16 }
0x14ae   : > { %v2347_v51 = vmul.f32 %v2346_v21, %v2346_v21  ;;  %2712 = vmatprep.subr.bf16.mxu1 %v3722_v17 }
0x14b0   : > { %2348 = vadd.xlane.f32.xlu1 %v2347_v51  ;;  %v3728_v51 = vld [vmem:[#allocation13 + $0x30] ss:$20 sps:$4 sm:$0xff]  }
0x14b1   : > { %2713 = vmatpush1.bf16.msra.mxu1 %v3720_v20 }
0x14b2   : > { %2714 = vmatprep.subr.bf16.mxu1 %v3728_v51 }
0x14b5   : > { %2715 = vmatpush1.bf16.msra.mxu1 %v3726_v23 }
0x14b6   : > { %2716 = vmatprep.subr.bf16.mxu1 %v3734_v24 }
0x14b9   : > { %2717 = vmatpush1.bf16.msra.mxu1 %v3732_v26 }
0x1539   : > { %v2349_v27 = vpop.xlane.xlu1 %2348 }
0x153a   : > { %v2350_v28 = vmul.f32 0.0078125, %v2349_v27  ;;  %v3735_v27 = vld [vmem:[#allocation13 + $0xc] ss:$20 sps:$4 sm:$0xff]  }
0x153c   : > { %v2351_v29 = vadd.f32 1e-12, %v2350_v28 }
0x153e   : > { %3770 = vrsqrt.f32 %v2351_v29 }
0x154b   : > { %v3771_v30 = vpop.eup %3770 }
0x154c   : > { %v2353_v33 = vmul.f32 %v3771_v30, %v2346_v21  ;;  %v3723_v21 = vld [vmem:[#allocation13 + $0x5c] ss:$20 sps:$4 sm:$0xff]  }
0x154e   : > { %v2354_v38 = vmul.f32 %v2353_v33, %v2341_v32  ;;  %v2471_v33 = vld [vmem:[#allocation7 + $0x44] ss:$0 sm:$0xff] }
0x1550   : > { %v2355_v39 = vadd.f32 %v2354_v38, %v2342_v35  ;;  %v2472_v38 = vld [vmem:[#allocation7 + $0x45] ss:$0 sm:$0xff] }
0x1552   : > { %v2373_v7 = vpack.c.bf16 %v2355_v39, %v2355_v39 }
0x1554   : > { %3402 = vmatmul.mubr.bf16.vlgmr.msra.gmra.mxu0 %v2373_v7 }
0x1555   : > { %2775 = vmatprep.mubr.bf16.mxu0 %v4043_v54  ;;  %v3693_v54 = vld [vmem:[#allocation13 + $0x124] ss:$20 sps:$4 sm:$0xff]  }
0x1556   : > { %2744 = vmatpush1.bf16.msra.mxu0 %v3693_v54 }
0x1557   : > { %2745 = vmatprep.subr.bf16.mxu0 %v3701_v62 }
0x155a   : > { %2746 = vmatpush1.bf16.msra.mxu0 %v3699_v0 }
0x155b   : > { %2747 = vmatprep.subr.bf16.mxu0 %v3707_v4 }
0x155e   : > { %2748 = vmatpush1.bf16.msra.mxu0 %v3705_v6 }
0x155f   : > { %2749 = vmatprep.subr.bf16.mxu0 %v3713_v31 }
0x1562   : > { %2750 = vmatpush1.bf16.msra.mxu0 %v3711_v13 }
0x1563   : > { %2751 = vmatprep.subr.bf16.mxu0 %v3719_v15 }
0x1566   : > { %2752 = vmatpush1.bf16.msra.mxu0 %v3717_v36 }
0x1567   : > { %2753 = vmatprep.subr.bf16.mxu0 %v3725_v18 }
0x156a   : > { %2754 = vmatpush1.bf16.msra.mxu0 %v3723_v21 }
0x156b   : > { %2755 = vmatprep.subr.bf16.mxu0 %v3731_v22 }
0x156e   : > { %2756 = vmatpush1.bf16.msra.mxu0 %v3729_v19 }
0x156f   : > { %2757 = vmatprep.subr.bf16.mxu0 %v3737_v25 }
0x1572   : > { %2758 = vmatpush1.bf16.msra.mxu0 %v3735_v27 }
0x1614   : > { %v2456_v41 = vpop.f32.mrf.mxu0 }
0x1615   : > { %v2457_v42 = vadd.f32 %v2456_v41, %v2372_v40  ;;  %v2519_v41 = vld [vmem:[#allocation7 + $0x46] ss:$8 sm:$0xf] }
0x1616   : > { %v3403_v43 = vpop.f32.mrf.mxu0 }
0x1617   : > { %v2462_v34 = vmul.f32 %v2457_v42, %v2457_v42  ;;  %v2525_v43 = vrot.slane %v2519_v41, %v4290_v10 }
0x1618   : > { %v2459_v44 = vpop.f32.mrf.mxu0 }
0x1619   : > { %v2463_v45 = vmul.f32 %v2462_v34, %v2457_v42  ;;  %v2533_v34 = vrot.slane %v2519_v41, %v4316_v53  ;;  %v2529_v44 = vrot.slane %v2519_v41, %v4293_v11 }
0x161a   : > { %v3404_v46 = vpop.f32.mrf.mxu0 }
0x161b   : > { %v2464_v47 = vmul.f32 0.044715, %v2463_v45 }
0x161d   : > { %v2465_v48 = vadd.f32 %v2464_v47, %v2457_v42 }
0x161f   : > { %v2466_v49 = vmul.f32 0.7978846, %v2465_v48 }
0x1621   : > { %3772 = vtanh.f32 %v2466_v49 }
0x162e   : > { %v3773_v50 = vpop.eup %3772 }
0x162f   : > { %v2468_v52 = vadd.f32 1.0, %v3773_v50 }
0x1631   : > { %v2469_v55 = vmul.f32 0.5, %v2468_v52 }
0x1633   : > { %v2470_v56 = vmul.f32 %v2469_v55, %v2457_v42  ;;  %v2536_v42 = vsub.s32 3, %v4287_v9 }
0x1635   : > { %2473 = vadd.xlane.f32.xlu1 %v2470_v56  ;;  %v2537_v45 = vrot.slane %v2519_v41, %v2536_v42 }
0x16be   : > { %v2474_v37 = vpop.xlane.xlu1 %2473 }
0x16bf   : > { %v2475_v1 = vmul.f32 0.0078125, %v2474_v37 }
0x16c1   : > { %v2476_v2 = vsub.f32 %v2470_v56, %v2475_v1 }
0x16c3   : > { %v2477_v3 = vmul.f32 %v2476_v2, %v2476_v2 }
0x16c5   : > { %2478 = vadd.xlane.f32.xlu1 %v2477_v3 }
0x174e   : > { %v2479_v28 = vpop.xlane.xlu1 %2478 }
0x174f   : > { %v2480_v29 = vmul.f32 0.0078125, %v2479_v28 }
0x1751   : > { %v2481_v30 = vadd.f32 1e-12, %v2480_v29 }
0x1753   : > { %3774 = vrsqrt.f32 %v2481_v30 }
0x1760   : > { %v3775_v32 = vpop.eup %3774 }
0x1761   : > { %v2483_v35 = vmul.f32 %v3775_v32, %v2476_v2 }
0x1763   : > { %v2484_v39 = vmul.f32 %v2483_v35, %v2471_v33 }
0x1765   : > { %v2485_v7 = vadd.f32 %v2484_v39, %v2472_v38 }
0x1767   : > { %v2520_v40 = vpack.c.bf16 %v2485_v7, %v2485_v7 }
0x1769   : > { %2735 = vmatmul.mubr.bf16.vlgmr.msra.gmra.mxu1 %v2520_v40  ;;  %2776 = vmatmul.mubr.bf16.vlgmr.msra.gmra.mxu0 %v2520_v40 }
0x1829   : > { %v2736_v46 = vpop.f32.mrf.mxu1  ;;  %v2777_v47 = vpop.f32.mrf.mxu0 }
0x182a   : > { %v2737_v48 = vadd.f32 %v2736_v46, %v2525_v43  ;;  %v2778_v49 = vadd.f32 %v2777_v47, %v2533_v34 }
0x182b   : > { %v2738_v50 = vpop.f32.mrf.mxu1  ;;  %v2779_v52 = vpop.f32.mrf.mxu0 }
0x182c   : > { %2784 = vst [vmem:[%s324_s28] sm:$0xff] %v2737_v48  ;;  %2786 = vst [vmem:[%s324_s28 + $0x10] sm:$0xff] %v2778_v49  ;;  %v2739_v9 = vadd.f32 %v2738_v50, %v2529_v44  ;;  %v2780_v55 = vadd.f32 %v2779_v52, %v2537_v45 }
0x182d   : > { %v2740_v10 = vpop.f32.mrf.mxu1  ;;  %v2781_v11 = vpop.f32.mrf.mxu0 }
0x182e   : > { %2785 = vst [vmem:[%s324_s28 + $0x8] sm:$0xff] %v2739_v9  ;;  %2787 = vst [vmem:[%s324_s28 + $0x18] sm:$0xff] %v2780_v55 }
0x182f   : > { %v2741_v53 = vpop.f32.mrf.mxu1  ;;  %v2782_v56 = vpop.f32.mrf.mxu0 }
0x1830   : > { %3957 = shalt.err (!%p3954_p6)
}
0x1831   : > { %s3958_s27 = scalar_lea.hbm %s4417_s13, 512  ;;  %s3962_s23 = scalar_lea.hbm %s4465_s7, 1024 }
0x1832   : > { %p3959_p8 = scmp.ne.s32.totalorder %s4417_s13, %s3958_s27  ;;  %p3963_p1 = scmp.lt.s32.totalorder %s4417_s13, %s4465_s7 }
0x1833   : > { %p3964_p9 = scmp.lt.s32.totalorder %s3962_s23, %s3958_s27 }
0x1834   : > { %p3960_p7 = pnand %p3959_p8, %p4129_p10 }
0x1835   : > { %p3965_p0 = por %p3964_p9, %p3963_p1 }
0x1836   : > { %p3961_p3 = pneg %p3960_p7 }
0x1838   : > { %p3966_p12 = pnand %p3965_p0, %p3961_p3 }
0x183a   : > { %3969 = shalt.err (!%p3966_p12)
}
0x183b   : > { %3429 = dma.vmem_to_hbm [thread:$0]  (%p4129_p10), %s4419_s10, 512, %s4417_s13, %s2789_s9  }
0x183c PF: > { %p3466_p13 = scmp.ge.s32.totalorder %s4022_s8, 2  ;;  %s2815_s28 = sand.u32 1, %s4010_s0  }
0x183d   : > { %s2816_s22 = scalar_lea.sflag [#allocation6], %s2815_s28 }
0x183e   : > { %p3451_p5 = pnand %p3466_p13, %p4133_p11 }
0x1840   : > { %p3452_p2 = pneg %p3451_p5 }
0x1842   : > { %4005 = dma.done.wait (%p3452_p2), %s2816_s22, 512  }
0x1843   : > { %4007 = vsyncadd (%p3452_p2), %s2816_s22, 4294966784  ;;  %p27_p4 = scmp.ge.s32.totalorder %s4116_s11, 4   ;;  %s4482_s0 = smov %s4014_s29 }
0x1844   : > { %s4483_s29 = smov %s4018_s30  ;;  %s4484_s30 = smov %s4127_s14 }
0x1845   : > { %s4485_s8 = smov %s4116_s11  ;;  %29 = sbr.rel (!%p27_p4) target bundleno = 22 (0x16), region = 107 }
0x184a   :  { %2821 = vsyncpa [#allocation5], 1 }
0x184b   :  { %2823 = vsyncpa [#allocation5 + $0x1], 1 }
0x184c   :  { %2824 = vsyncpa [#allocation8], 1 }
0x184d   :  { %2825 = vsyncpa [#allocation11], 1 }
0x184e   :  { %2826 = vsyncpa [#allocation14], 1 }
0x184f   :  { %2827 = vsyncpa [#allocation6], 1 }
0x1850   :  { %2829 = vsyncpa [#allocation6 + $0x1], 1 }

</bundles_post_ra>
